<compile_context>
chip_gen: v6e
topology: v6e:2x2x1
jax: 0.10.0
libtpu: 0.0.40
codegen_flags: <defaults>
</compile_context>

<pallas_src>
import jax
import jax.numpy as jnp
from jax import lax
from jax.experimental import pallas as pl
from jax.experimental.pallas import tpu as pltpu


def bigru_kernel(len_ref, xpf_ref, xpb_ref, whf_ref, bhnf_ref, whb_ref,
                 bhnb_ref, outf_ref, outb_ref, hnf_ref, hnb_ref,
                 hf_scr, hb_scr):
    # len_ref : (B, 1)          int32 sequence lengths (padded rows = 0)
    # xp*_ref : (Tt, B, 3Hp)    bf16 gate pre-activations for this T chunk
    #                           (fwd chunk i, bwd chunk nT-1-i)
    # wh*_ref : (Hp, 3Hp)       fused recurrent weights [r|z|n], f32
    # bhn*    : (1, Hp)         b_hn (stays inside r*(...), not pre-folded)
    # out*_ref: (Tt, B, Hp)     per-direction output slab (lane-dense)
    # hn*_ref : (B, Hp)         per-direction final hidden
    # h*_scr  : (B, Hp)         hidden carried across grid steps (VMEM scratch)
    Tt, B, _ = xpf_ref.shape
    Hp = whf_ref.shape[0]
    step = pl.program_id(0)
    n_steps = pl.num_programs(0)

    @pl.when(step == 0)
    def _():
        hf_scr[...] = jnp.zeros_like(hf_scr)
        hb_scr[...] = jnp.zeros_like(hb_scr)

    lengths = len_ref[...]                                   # (B, 1) int32
    wh_f = whf_ref[...]                                      # (Hp, 3Hp)
    wh_b = whb_ref[...]
    # Hoist bias broadcasts out of the serial loop (JAX doesn't CSE them).
    bhn_f = jnp.broadcast_to(bhnf_ref[...], (B, Hp))
    bhn_b = jnp.broadcast_to(bhnb_ref[...], (B, Hp))
    zero = jnp.zeros((B, Hp), jnp.float32)

    t0_f = step * Tt                       # global time of fwd-chunk row 0
    t0_b = (n_steps - 1 - step) * Tt       # global time of bwd-chunk row 0

    def gru_step(t, h, gx, wh, bhn):
        # One fused matmul for all three gates (MXU), 128-aligned slices.
        gh = jnp.dot(h, wh, preferred_element_type=jnp.float32)  # (B, 3Hp)
        r = jax.nn.sigmoid(gx[:, :Hp] + gh[:, :Hp])
        z = jax.nn.sigmoid(gx[:, Hp:2 * Hp] + gh[:, Hp:2 * Hp])
        n = jnp.tanh(gx[:, 2 * Hp:] + r * (gh[:, 2 * Hp:] + bhn))
        h_new = (1.0 - z) * n + z * h
        valid = t < lengths                                   # (B, 1) bool
        h_keep = jnp.where(valid, h_new, h)                   # freeze past end
        o = jnp.where(valid, h_new, zero)                     # zero padded out
        return h_keep, o

    # Fused fwd+bwd inner loop: two independent chains -> ILP on one core.
    def body(j, carry):
        h_f, h_b = carry
        # forward: local j, global t0_f + j
        gx_f = xpf_ref[j].astype(jnp.float32)
        h_f, o_f = gru_step(t0_f + j, h_f, gx_f, wh_f, bhn_f)
        outf_ref[j] = o_f
        # backward: local Tt-1-j (reverse order), global t0_b + Tt-1-j
        jb = Tt - 1 - j
        gx_b = xpb_ref[jb].astype(jnp.float32)
        h_b, o_b = gru_step(t0_b + jb, h_b, gx_b, wh_b, bhn_b)
        outb_ref[jb] = o_b
        return h_f, h_b

    h_f, h_b = lax.fori_loop(0, Tt, body, (hf_scr[...], hb_scr[...]),
                             unroll=True)

    # Persist hidden for the next grid step and the final-hidden outputs
    # (hn block index is constant -> resident; final writeback carries the
    # last grid step's values, i.e. h at t = len-1 (fwd) / t = 0 (bwd)).
    hf_scr[...] = h_f
    hb_scr[...] = h_b
    hnf_ref[...] = h_f
    hnb_ref[...] = h_b


def encoder_forward(params, tokens, src_len, *, t_chunk=4):
    """tokens: (T, B) int32, src_len: (B,) int — returns (outputs, state)."""
    T, B = tokens.shape
    E = params["embedding"].shape[1]
    H = params["wh_f"].shape[0]
    LANE = 128
    Hp = -(-H // LANE) * LANE            # lane-pad hidden size

    # ---- lane-pad every per-gate block with zeros ---------------------------
    # Zero-padded weight rows/cols + zero-padded gx  =>  padded h columns stay
    # exactly 0 through the recurrence, so results are unchanged.
    def pad_blocks(w, axis, nblk):
        blocks = jnp.split(w, nblk, axis=axis)
        pw = [(0, 0)] * w.ndim
        pw[axis] = (0, Hp - H)
        return jnp.concatenate([jnp.pad(b, pw) for b in blocks], axis=axis)

    wi = pad_blocks(params["wi"], 1, 6)                      # (E, 6Hp)
    bi = pad_blocks(params["bi"].reshape(1, -1), 1, 6)       # (1, 6Hp)
    wh_f = pad_blocks(jnp.pad(params["wh_f"], ((0, Hp - H), (0, 0))), 1, 3)
    wh_b = pad_blocks(jnp.pad(params["wh_b"], ((0, Hp - H), (0, 0))), 1, 3)
    bhn_f = jnp.pad(params["bhn_f"], ((0, 0), (0, Hp - H)))  # (1, Hp)
    bhn_b = jnp.pad(params["bhn_b"], ((0, 0), (0, Hp - H)))

    # ---- hoisted input projection: one big MXU matmul (both dirs, 3 gates,
    # b_ih + b_hh (r/z) and b_in folded) -------------------------------------
    emb = params["embedding"][tokens]                        # (T, B, E) gather
    xproj = (jnp.dot(emb.reshape(T * B, E), wi,
                     preferred_element_type=jnp.float32) + bi
             ).reshape(T, B, 6 * Hp)
    # bf16 storage for the dominant streamed tensor; gate math stays f32.
    xp_f = xproj[:, :, :3 * Hp].astype(jnp.bfloat16)
    xp_b = xproj[:, :, 3 * Hp:].astype(jnp.bfloat16)

    # ---- pad batch to 8 sublanes, time to a multiple of the T chunk --------
    B_pad = max(8, -(-B // 8) * 8)
    Tt = min(t_chunk, T)
    T_pad = -(-T // Tt) * Tt
    nT = T_pad // Tt
    pad_tb = ((0, T_pad - T), (0, B_pad - B), (0, 0))
    xp_f = jnp.pad(xp_f, pad_tb)
    xp_b = jnp.pad(xp_b, pad_tb)
    # Padded batch rows / time steps get length 0 -> never valid -> stay zero.
    lengths = jnp.zeros((B_pad, 1), jnp.int32).at[:B, 0].set(
        src_len.astype(jnp.int32))

    # ---- VMEM budget for compiler params (fits v7x's 64 MiB / 32 MiB scoped)
    xp_tile = Tt * B_pad * 3 * Hp * 2                        # bf16, one dir
    out_tile = Tt * B_pad * Hp * 4                           # f32,  one dir
    resident = ((2 * Hp * 3 * Hp + 2 * Hp) * 4               # weights + b_hn
                + B_pad * 4                                  # lengths
                + 4 * B_pad * Hp * 4)                        # hn + h scratch
    budget = 2 * 2 * (xp_tile + out_tile) + resident + (4 << 20)
    vmem_limit = int(min(max(budget, 32 << 20), 64 << 20))

    grid_spec = pltpu.PrefetchScalarGridSpec(
        num_scalar_prefetch=0,
        grid=(nT,),
        in_specs=[
            pl.BlockSpec((B_pad, 1), lambda i: (0, 0)),                  # len
            pl.BlockSpec((Tt, B_pad, 3 * Hp), lambda i: (i, 0, 0)),      # xp_f
            pl.BlockSpec((Tt, B_pad, 3 * Hp),
                         lambda i: (nT - 1 - i, 0, 0)),                  # xp_b
            pl.BlockSpec((Hp, 3 * Hp), lambda i: (0, 0)),                # wh_f
            pl.BlockSpec((1, Hp), lambda i: (0, 0)),                     # bhn_f
            pl.BlockSpec((Hp, 3 * Hp), lambda i: (0, 0)),                # wh_b
            pl.BlockSpec((1, Hp), lambda i: (0, 0)),                     # bhn_b
        ],
        out_specs=(
            pl.BlockSpec((Tt, B_pad, Hp), lambda i: (i, 0, 0)),          # out_f
            pl.BlockSpec((Tt, B_pad, Hp), lambda i: (nT - 1 - i, 0, 0)), # out_b
            pl.BlockSpec((B_pad, Hp), lambda i: (0, 0)),                 # hn_f
            pl.BlockSpec((B_pad, Hp), lambda i: (0, 0)),                 # hn_b
        ),
        scratch_shapes=[pltpu.VMEM((B_pad, Hp), jnp.float32),            # h_f
                        pltpu.VMEM((B_pad, Hp), jnp.float32)],           # h_b
    )

    out_f, out_b, hn_f, hn_b = pl.pallas_call(
        bigru_kernel,
        grid_spec=grid_spec,
        out_shape=(
            jax.ShapeDtypeStruct((T_pad, B_pad, Hp), jnp.float32),
            jax.ShapeDtypeStruct((T_pad, B_pad, Hp), jnp.float32),
            jax.ShapeDtypeStruct((B_pad, Hp), jnp.float32),
            jax.ShapeDtypeStruct((B_pad, Hp), jnp.float32),
        ),
        compiler_params=pltpu.CompilerParams(
            dimension_semantics=("arbitrary",),      # serial recurrence over T
            vmem_limit_bytes=vmem_limit),
    )(lengths, xp_f, xp_b, wh_f, bhn_f, wh_b, bhn_b)

    outputs = jnp.concatenate([out_f[:T, :B, :H], out_b[:T, :B, :H]], axis=-1)
    # Replicates `state.view(1, B, -1)` on the contiguous (2, B, H) hidden
    # exactly (C-order flat reinterpretation), as the PyTorch module does.
    state = jnp.stack([hn_f[:B, :H], hn_b[:B, :H]], axis=0).reshape(1, B, 2 * H)
    return outputs, state


def init_params(key, vocab_size, embed_size, hidden_size):
    ks = jax.random.split(key, 3)
    s = 1.0 / float(hidden_size) ** 0.5
    H = hidden_size

    # nn.Embedding default init: N(0, 1)
    emb = jax.random.normal(ks[0], (vocab_size, embed_size), jnp.float32)

    def u(k, shape):
        return jax.random.uniform(k, shape, jnp.float32, -s, s)

    def direction(kbase):
        k1, k2, k3, k4 = jax.random.split(kbase, 4)
        w_ih = u(k1, (3 * H, embed_size))   # rows: [r, z, n] (PyTorch layout)
        w_hh = u(k2, (3 * H, H))
        b_ih = u(k3, (3 * H,))
        b_hh = u(k4, (3 * H,))
        wi = w_ih.T                          # (E, 3H), column blocks [r|z|n]
        wh = w_hh.T                          # (H, 3H)
        # Fold input-side biases: [b_ir+b_hr, b_iz+b_hz, b_in]; keep b_hn apart
        # because it sits inside r * (h@W_hn + b_hn).
        bi = jnp.concatenate([b_ih[:H] + b_hh[:H],
                              b_ih[H:2 * H] + b_hh[H:2 * H],
                              b_ih[2 * H:]])               # (3H,)
        bhn = b_hh[2 * H:].reshape(1, H)
        return wi, wh, bi, bhn

    wi_f, wh_f, bi_f, bhn_f = direction(ks[1])
    wi_b, wh_b, bi_b, bhn_b = direction(ks[2])
    return dict(
        embedding=emb,
        wi=jnp.concatenate([wi_f, wi_b], axis=1),          # (E, 6H)
        bi=jnp.concatenate([bi_f, bi_b]),                  # (6H,)
        wh_f=wh_f, bhn_f=bhn_f,
        wh_b=wh_b, bhn_b=bhn_b,
    )


if __name__ == "__main__":
    VOCAB, EMBED, HIDDEN = 50, 32, 32
    T, B = 8, 4

    key = jax.random.PRNGKey(0)
    kp, kt = jax.random.split(key)
    params = init_params(kp, VOCAB, EMBED, HIDDEN)

    tokens = jax.random.randint(kt, (T, B), 0, VOCAB, dtype=jnp.int32)
    # unsorted lengths (enforce_sorted=False in the PyTorch module); max == T
    src_len = jnp.array([5, 8, 3, 6], dtype=jnp.int32)

    outputs, state = jax.jit(encoder_forward)(params, tokens, src_len)
    jax.block_until_ready((outputs, state))

    assert outputs.shape == (T, B, 2 * HIDDEN)
    assert state.shape == (1, B, 2 * HIDDEN)
    print("KERNEL_OK")
</pallas_src>

<mosaic_0001>
module attributes {stable_mosaic.version = 11 : i64} {
  func.func @bigru_kernel(%arg0: i32, %arg1: memref<8x1xi32, #tpu.memory_space<vmem>>, %arg2: memref<4x8x384xbf16, #tpu.memory_space<vmem>>, %arg3: memref<4x8x384xbf16, #tpu.memory_space<vmem>>, %arg4: memref<128x384xf32, #tpu.memory_space<vmem>>, %arg5: memref<1x128xf32, #tpu.memory_space<vmem>>, %arg6: memref<128x384xf32, #tpu.memory_space<vmem>>, %arg7: memref<1x128xf32, #tpu.memory_space<vmem>>, %arg8: memref<4x8x128xf32, #tpu.memory_space<vmem>>, %arg9: memref<4x8x128xf32, #tpu.memory_space<vmem>>, %arg10: memref<8x128xf32, #tpu.memory_space<vmem>>, %arg11: memref<8x128xf32, #tpu.memory_space<vmem>>, %arg12: memref<8x128xf32, #tpu.memory_space<vmem>>, %arg13: memref<8x128xf32, #tpu.memory_space<vmem>>) attributes {dimension_semantics = [#tpu.dimension_semantics<arbitrary>], iteration_bounds = array<i64: 2>, scalar_prefetch = 0 : i64, scratch_operands = 2 : i64, tpu.core_type = #tpu.core_type<tc>, window_params = [{pipeline_mode = #tpu.pipeline_mode<synchronous>, transform_indices = @transform_0, window_bounds = array<i64: 8, 1>}, {transform_indices = @transform_1, window_bounds = array<i64: 4, 8, 384>}, {transform_indices = @transform_2, window_bounds = array<i64: 4, 8, 384>}, {pipeline_mode = #tpu.pipeline_mode<synchronous>, transform_indices = @transform_3, window_bounds = array<i64: 128, 384>}, {pipeline_mode = #tpu.pipeline_mode<synchronous>, transform_indices = @transform_4, window_bounds = array<i64: 1, 128>}, {pipeline_mode = #tpu.pipeline_mode<synchronous>, transform_indices = @transform_5, window_bounds = array<i64: 128, 384>}, {pipeline_mode = #tpu.pipeline_mode<synchronous>, transform_indices = @transform_6, window_bounds = array<i64: 1, 128>}, {transform_indices = @transform_7, window_bounds = array<i64: 4, 8, 128>}, {transform_indices = @transform_8, window_bounds = array<i64: 4, 8, 128>}, {pipeline_mode = #tpu.pipeline_mode<synchronous>, transform_indices = @transform_9, window_bounds = array<i64: 8, 128>}, {pipeline_mode = #tpu.pipeline_mode<synchronous>, transform_indices = @transform_10, window_bounds = array<i64: 8, 128>}]} {
    %c0_i32 = arith.constant 0 : i32
    %0 = arith.cmpi eq, %arg0, %c0_i32 : i32
    %1 = arith.extui %0 : i1 to i32
    %c0_i32_0 = arith.constant 0 : i32
    %2 = arith.cmpi ne, %1, %c0_i32_0 : i32
    scf.if %2 {
      %cst_94 = arith.constant 0.000000e+00 : f32
      %386 = vector.broadcast %cst_94 : f32 to vector<8x128xf32>
      %c0_95 = arith.constant 0 : index
      %c0_96 = arith.constant 0 : index
      %387 = vector.load %arg12[%c0_95, %c0_96] : memref<8x128xf32, #tpu.memory_space<vmem>>, vector<8x128xf32>
      tpu.vector_store %arg12[%c0_95, %c0_96], %386 {strides = array<i32>} : memref<8x128xf32, #tpu.memory_space<vmem>>, vector<8x128xf32>,
      %cst_97 = arith.constant 0.000000e+00 : f32
      %388 = vector.broadcast %cst_97 : f32 to vector<8x128xf32>
      %c0_98 = arith.constant 0 : index
      %c0_99 = arith.constant 0 : index
      %389 = vector.load %arg13[%c0_98, %c0_99] : memref<8x128xf32, #tpu.memory_space<vmem>>, vector<8x128xf32>
      tpu.vector_store %arg13[%c0_98, %c0_99], %388 {strides = array<i32>} : memref<8x128xf32, #tpu.memory_space<vmem>>, vector<8x128xf32>,
    } else {
    }
    %c0 = arith.constant 0 : index
    %c0_1 = arith.constant 0 : index
    %3 = vector.load %arg1[%c0, %c0_1] : memref<8x1xi32, #tpu.memory_space<vmem>>, vector<8x1xi32>
    %c0_2 = arith.constant 0 : index
    %c0_3 = arith.constant 0 : index
    %4 = vector.load %arg4[%c0_2, %c0_3] : memref<128x384xf32, #tpu.memory_space<vmem>>, vector<128x384xf32>
    %c0_4 = arith.constant 0 : index
    %c0_5 = arith.constant 0 : index
    %5 = vector.load %arg6[%c0_4, %c0_5] : memref<128x384xf32, #tpu.memory_space<vmem>>, vector<128x384xf32>
    %c0_6 = arith.constant 0 : index
    %c0_7 = arith.constant 0 : index
    %6 = vector.load %arg5[%c0_6, %c0_7] : memref<1x128xf32, #tpu.memory_space<vmem>>, vector<1x128xf32>
    %7 = vector.shape_cast %6 : vector<1x128xf32> to vector<1x128xf32>
    %8 = vector.broadcast %7 : vector<1x128xf32> to vector<8x128xf32>
    %c0_8 = arith.constant 0 : index
    %c0_9 = arith.constant 0 : index
    %9 = vector.load %arg7[%c0_8, %c0_9] : memref<1x128xf32, #tpu.memory_space<vmem>>, vector<1x128xf32>
    %10 = vector.shape_cast %9 : vector<1x128xf32> to vector<1x128xf32>
    %11 = vector.broadcast %10 : vector<1x128xf32> to vector<8x128xf32>
    %cst = arith.constant 0.000000e+00 : f32
    %12 = vector.broadcast %cst : f32 to vector<8x128xf32>
    %c4_i32 = arith.constant 4 : i32
    %13 = arith.muli %arg0, %c4_i32 : i32
    %c1_i32 = arith.constant 1 : i32
    %14 = arith.subi %c1_i32, %arg0 : i32
    %c4_i32_10 = arith.constant 4 : i32
    %15 = arith.muli %14, %c4_i32_10 : i32
    %c0_11 = arith.constant 0 : index
    %c0_12 = arith.constant 0 : index
    %16 = vector.load %arg12[%c0_11, %c0_12] : memref<8x128xf32, #tpu.memory_space<vmem>>, vector<8x128xf32>
    %c0_13 = arith.constant 0 : index
    %c0_14 = arith.constant 0 : index
    %17 = vector.load %arg13[%c0_13, %c0_14] : memref<8x128xf32, #tpu.memory_space<vmem>>, vector<8x128xf32>
    %c0_i32_15 = arith.constant 0 : i32
    %18 = arith.index_cast %c0_i32_15 : i32 to index
    %c0_16 = arith.constant 0 : index
    %c0_17 = arith.constant 0 : index
    %19 = vector.load %arg2[%18, %c0_16, %c0_17] : memref<4x8x384xbf16, #tpu.memory_space<vmem>>, vector<1x8x384xbf16>
    %20 = vector.shape_cast %19 : vector<1x8x384xbf16> to vector<8x384xbf16>
    %21 = arith.extf %20 : vector<8x384xbf16> to vector<8x384xf32>
    %22 = arith.addi %13, %c0_i32_15 : i32
    %cst_18 = arith.constant dense<0.000000e+00> : vector<8x384xf32>
    %23 = tpu.matmul %16, %4, %cst_18 {dimension_numbers = #tpu.dot_dimension_numbers<[1], [0], [0], [1], [0, 0, 1, 1], [], []>} : vector<8x128xf32>, vector<128x384xf32>, vector<8x384xf32> -> vector<8x384xf32>
    %24 = vector.extract_strided_slice %21 {offsets = [0, 0], sizes = [8, 128], strides = [1, 1]} : vector<8x384xf32> to vector<8x128xf32>
    %25 = vector.extract_strided_slice %23 {offsets = [0, 0], sizes = [8, 128], strides = [1, 1]} : vector<8x384xf32> to vector<8x128xf32>
    %26 = arith.addf %24, %25 : vector<8x128xf32>
    %27 = arith.negf %26 : vector<8x128xf32>
    %28 = math.exp %27 : vector<8x128xf32>
    %cst_19 = arith.constant 1.000000e+00 : f32
    %29 = vector.broadcast %cst_19 : f32 to vector<8x128xf32>
    %30 = arith.addf %29, %28 : vector<8x128xf32>
    %31 = arith.divf %29, %30 : vector<8x128xf32>
    %32 = vector.extract_strided_slice %21 {offsets = [0, 128], sizes = [8, 128], strides = [1, 1]} : vector<8x384xf32> to vector<8x128xf32>
    %33 = vector.extract_strided_slice %23 {offsets = [0, 128], sizes = [8, 128], strides = [1, 1]} : vector<8x384xf32> to vector<8x128xf32>
    %34 = arith.addf %32, %33 : vector<8x128xf32>
    %35 = arith.negf %34 : vector<8x128xf32>
    %36 = math.exp %35 : vector<8x128xf32>
    %cst_20 = arith.constant 1.000000e+00 : f32
    %37 = vector.broadcast %cst_20 : f32 to vector<8x128xf32>
    %38 = arith.addf %37, %36 : vector<8x128xf32>
    %39 = arith.divf %37, %38 : vector<8x128xf32>
    %40 = vector.extract_strided_slice %21 {offsets = [0, 256], sizes = [8, 128], strides = [1, 1]} : vector<8x384xf32> to vector<8x128xf32>
    %41 = vector.extract_strided_slice %23 {offsets = [0, 256], sizes = [8, 128], strides = [1, 1]} : vector<8x384xf32> to vector<8x128xf32>
    %42 = arith.addf %41, %8 : vector<8x128xf32>
    %43 = arith.mulf %31, %42 : vector<8x128xf32>
    %44 = arith.addf %40, %43 : vector<8x128xf32>
    %45 = math.tanh %44 : vector<8x128xf32>
    %cst_21 = arith.constant 1.000000e+00 : f32
    %46 = vector.broadcast %cst_21 : f32 to vector<8x128xf32>
    %47 = arith.subf %46, %39 : vector<8x128xf32>
    %48 = arith.mulf %47, %45 : vector<8x128xf32>
    %49 = arith.mulf %39, %16 : vector<8x128xf32>
    %50 = arith.addf %48, %49 : vector<8x128xf32>
    %51 = vector.broadcast %22 : i32 to vector<8x1xi32>
    %52 = arith.cmpi slt, %51, %3 : vector<8x1xi32>
    %53 = vector.shape_cast %52 : vector<8x1xi1> to vector<8x1xi1>
    %54 = vector.broadcast %53 : vector<8x1xi1> to vector<8x128xi1>
    %55 = arith.select %54, %50, %16 : vector<8x128xi1>, vector<8x128xf32>
    %56 = vector.shape_cast %52 : vector<8x1xi1> to vector<8x1xi1>
    %57 = vector.broadcast %56 : vector<8x1xi1> to vector<8x128xi1>
    %58 = arith.select %57, %50, %12 : vector<8x128xi1>, vector<8x128xf32>
    %59 = arith.index_cast %c0_i32_15 : i32 to index
    %c0_22 = arith.constant 0 : index
    %c0_23 = arith.constant 0 : index
    %60 = vector.load %arg8[%59, %c0_22, %c0_23] : memref<4x8x128xf32, #tpu.memory_space<vmem>>, vector<1x8x128xf32>
    %61 = vector.shape_cast %60 : vector<1x8x128xf32> to vector<8x128xf32>
    %62 = vector.shape_cast %58 : vector<8x128xf32> to vector<1x8x128xf32>
    tpu.vector_store %arg8[%59, %c0_22, %c0_23], %62 {strides = array<i32>} : memref<4x8x128xf32, #tpu.memory_space<vmem>>, vector<1x8x128xf32>,
    %c3_i32 = arith.constant 3 : i32
    %63 = arith.subi %c3_i32, %c0_i32_15 : i32
    %64 = arith.index_cast %63 : i32 to index
    %c0_24 = arith.constant 0 : index
    %c0_25 = arith.constant 0 : index
    %65 = vector.load %arg3[%64, %c0_24, %c0_25] : memref<4x8x384xbf16, #tpu.memory_space<vmem>>, vector<1x8x384xbf16>
    %66 = vector.shape_cast %65 : vector<1x8x384xbf16> to vector<8x384xbf16>
    %67 = arith.extf %66 : vector<8x384xbf16> to vector<8x384xf32>
    %68 = arith.addi %15, %63 : i32
    %cst_26 = arith.constant dense<0.000000e+00> : vector<8x384xf32>
    %69 = tpu.matmul %17, %5, %cst_26 {dimension_numbers = #tpu.dot_dimension_numbers<[1], [0], [0], [1], [0, 0, 1, 1], [], []>} : vector<8x128xf32>, vector<128x384xf32>, vector<8x384xf32> -> vector<8x384xf32>
    %70 = vector.extract_strided_slice %67 {offsets = [0, 0], sizes = [8, 128], strides = [1, 1]} : vector<8x384xf32> to vector<8x128xf32>
    %71 = vector.extract_strided_slice %69 {offsets = [0, 0], sizes = [8, 128], strides = [1, 1]} : vector<8x384xf32> to vector<8x128xf32>
    %72 = arith.addf %70, %71 : vector<8x128xf32>
    %73 = arith.negf %72 : vector<8x128xf32>
    %74 = math.exp %73 : vector<8x128xf32>
    %cst_27 = arith.constant 1.000000e+00 : f32
    %75 = vector.broadcast %cst_27 : f32 to vector<8x128xf32>
    %76 = arith.addf %75, %74 : vector<8x128xf32>
    %77 = arith.divf %75, %76 : vector<8x128xf32>
    %78 = vector.extract_strided_slice %67 {offsets = [0, 128], sizes = [8, 128], strides = [1, 1]} : vector<8x384xf32> to vector<8x128xf32>
    %79 = vector.extract_strided_slice %69 {offsets = [0, 128], sizes = [8, 128], strides = [1, 1]} : vector<8x384xf32> to vector<8x128xf32>
    %80 = arith.addf %78, %79 : vector<8x128xf32>
    %81 = arith.negf %80 : vector<8x128xf32>
    %82 = math.exp %81 : vector<8x128xf32>
    %cst_28 = arith.constant 1.000000e+00 : f32
    %83 = vector.broadcast %cst_28 : f32 to vector<8x128xf32>
    %84 = arith.addf %83, %82 : vector<8x128xf32>
    %85 = arith.divf %83, %84 : vector<8x128xf32>
    %86 = vector.extract_strided_slice %67 {offsets = [0, 256], sizes = [8, 128], strides = [1, 1]} : vector<8x384xf32> to vector<8x128xf32>
    %87 = vector.extract_strided_slice %69 {offsets = [0, 256], sizes = [8, 128], strides = [1, 1]} : vector<8x384xf32> to vector<8x128xf32>
    %88 = arith.addf %87, %11 : vector<8x128xf32>
    %89 = arith.mulf %77, %88 : vector<8x128xf32>
    %90 = arith.addf %86, %89 : vector<8x128xf32>
    %91 = math.tanh %90 : vector<8x128xf32>
    %cst_29 = arith.constant 1.000000e+00 : f32
    %92 = vector.broadcast %cst_29 : f32 to vector<8x128xf32>
    %93 = arith.subf %92, %85 : vector<8x128xf32>
    %94 = arith.mulf %93, %91 : vector<8x128xf32>
    %95 = arith.mulf %85, %17 : vector<8x128xf32>
    %96 = arith.addf %94, %95 : vector<8x128xf32>
    %97 = vector.broadcast %68 : i32 to vector<8x1xi32>
    %98 = arith.cmpi slt, %97, %3 : vector<8x1xi32>
    %99 = vector.shape_cast %98 : vector<8x1xi1> to vector<8x1xi1>
    %100 = vector.broadcast %99 : vector<8x1xi1> to vector<8x128xi1>
    %101 = arith.select %100, %96, %17 : vector<8x128xi1>, vector<8x128xf32>
    %102 = vector.shape_cast %98 : vector<8x1xi1> to vector<8x1xi1>
    %103 = vector.broadcast %102 : vector<8x1xi1> to vector<8x128xi1>
    %104 = arith.select %103, %96, %12 : vector<8x128xi1>, vector<8x128xf32>
    %105 = arith.index_cast %63 : i32 to index
    %c0_30 = arith.constant 0 : index
    %c0_31 = arith.constant 0 : index
    %106 = vector.load %arg9[%105, %c0_30, %c0_31] : memref<4x8x128xf32, #tpu.memory_space<vmem>>, vector<1x8x128xf32>
    %107 = vector.shape_cast %106 : vector<1x8x128xf32> to vector<8x128xf32>
    %108 = vector.shape_cast %104 : vector<8x128xf32> to vector<1x8x128xf32>
    tpu.vector_store %arg9[%105, %c0_30, %c0_31], %108 {strides = array<i32>} : memref<4x8x128xf32, #tpu.memory_space<vmem>>, vector<1x8x128xf32>,
    %c1_i32_32 = arith.constant 1 : i32
    %109 = arith.index_cast %c1_i32_32 : i32 to index
    %c0_33 = arith.constant 0 : index
    %c0_34 = arith.constant 0 : index
    %110 = vector.load %arg2[%109, %c0_33, %c0_34] : memref<4x8x384xbf16, #tpu.memory_space<vmem>>, vector<1x8x384xbf16>
    %111 = vector.shape_cast %110 : vector<1x8x384xbf16> to vector<8x384xbf16>
    %112 = arith.extf %111 : vector<8x384xbf16> to vector<8x384xf32>
    %113 = arith.addi %13, %c1_i32_32 : i32
    %cst_35 = arith.constant dense<0.000000e+00> : vector<8x384xf32>
    %114 = tpu.matmul %55, %4, %cst_35 {dimension_numbers = #tpu.dot_dimension_numbers<[1], [0], [0], [1], [0, 0, 1, 1], [], []>} : vector<8x128xf32>, vector<128x384xf32>, vector<8x384xf32> -> vector<8x384xf32>
    %115 = vector.extract_strided_slice %112 {offsets = [0, 0], sizes = [8, 128], strides = [1, 1]} : vector<8x384xf32> to vector<8x128xf32>
    %116 = vector.extract_strided_slice %114 {offsets = [0, 0], sizes = [8, 128], strides = [1, 1]} : vector<8x384xf32> to vector<8x128xf32>
    %117 = arith.addf %115, %116 : vector<8x128xf32>
    %118 = arith.negf %117 : vector<8x128xf32>
    %119 = math.exp %118 : vector<8x128xf32>
    %cst_36 = arith.constant 1.000000e+00 : f32
    %120 = vector.broadcast %cst_36 : f32 to vector<8x128xf32>
    %121 = arith.addf %120, %119 : vector<8x128xf32>
    %122 = arith.divf %120, %121 : vector<8x128xf32>
    %123 = vector.extract_strided_slice %112 {offsets = [0, 128], sizes = [8, 128], strides = [1, 1]} : vector<8x384xf32> to vector<8x128xf32>
    %124 = vector.extract_strided_slice %114 {offsets = [0, 128], sizes = [8, 128], strides = [1, 1]} : vector<8x384xf32> to vector<8x128xf32>
    %125 = arith.addf %123, %124 : vector<8x128xf32>
    %126 = arith.negf %125 : vector<8x128xf32>
    %127 = math.exp %126 : vector<8x128xf32>
    %cst_37 = arith.constant 1.000000e+00 : f32
    %128 = vector.broadcast %cst_37 : f32 to vector<8x128xf32>
    %129 = arith.addf %128, %127 : vector<8x128xf32>
    %130 = arith.divf %128, %129 : vector<8x128xf32>
    %131 = vector.extract_strided_slice %112 {offsets = [0, 256], sizes = [8, 128], strides = [1, 1]} : vector<8x384xf32> to vector<8x128xf32>
    %132 = vector.extract_strided_slice %114 {offsets = [0, 256], sizes = [8, 128], strides = [1, 1]} : vector<8x384xf32> to vector<8x128xf32>
    %133 = arith.addf %132, %8 : vector<8x128xf32>
    %134 = arith.mulf %122, %133 : vector<8x128xf32>
    %135 = arith.addf %131, %134 : vector<8x128xf32>
    %136 = math.tanh %135 : vector<8x128xf32>
    %cst_38 = arith.constant 1.000000e+00 : f32
    %137 = vector.broadcast %cst_38 : f32 to vector<8x128xf32>
    %138 = arith.subf %137, %130 : vector<8x128xf32>
    %139 = arith.mulf %138, %136 : vector<8x128xf32>
    %140 = arith.mulf %130, %55 : vector<8x128xf32>
    %141 = arith.addf %139, %140 : vector<8x128xf32>
    %142 = vector.broadcast %113 : i32 to vector<8x1xi32>
    %143 = arith.cmpi slt, %142, %3 : vector<8x1xi32>
    %144 = vector.shape_cast %143 : vector<8x1xi1> to vector<8x1xi1>
    %145 = vector.broadcast %144 : vector<8x1xi1> to vector<8x128xi1>
    %146 = arith.select %145, %141, %55 : vector<8x128xi1>, vector<8x128xf32>
    %147 = vector.shape_cast %143 : vector<8x1xi1> to vector<8x1xi1>
    %148 = vector.broadcast %147 : vector<8x1xi1> to vector<8x128xi1>
    %149 = arith.select %148, %141, %12 : vector<8x128xi1>, vector<8x128xf32>
    %150 = arith.index_cast %c1_i32_32 : i32 to index
    %c0_39 = arith.constant 0 : index
    %c0_40 = arith.constant 0 : index
    %151 = vector.load %arg8[%150, %c0_39, %c0_40] : memref<4x8x128xf32, #tpu.memory_space<vmem>>, vector<1x8x128xf32>
    %152 = vector.shape_cast %151 : vector<1x8x128xf32> to vector<8x128xf32>
    %153 = vector.shape_cast %149 : vector<8x128xf32> to vector<1x8x128xf32>
    tpu.vector_store %arg8[%150, %c0_39, %c0_40], %153 {strides = array<i32>} : memref<4x8x128xf32, #tpu.memory_space<vmem>>, vector<1x8x128xf32>,
    %c3_i32_41 = arith.constant 3 : i32
    %154 = arith.subi %c3_i32_41, %c1_i32_32 : i32
    %155 = arith.index_cast %154 : i32 to index
    %c0_42 = arith.constant 0 : index
    %c0_43 = arith.constant 0 : index
    %156 = vector.load %arg3[%155, %c0_42, %c0_43] : memref<4x8x384xbf16, #tpu.memory_space<vmem>>, vector<1x8x384xbf16>
    %157 = vector.shape_cast %156 : vector<1x8x384xbf16> to vector<8x384xbf16>
    %158 = arith.extf %157 : vector<8x384xbf16> to vector<8x384xf32>
    %159 = arith.addi %15, %154 : i32
    %cst_44 = arith.constant dense<0.000000e+00> : vector<8x384xf32>
    %160 = tpu.matmul %101, %5, %cst_44 {dimension_numbers = #tpu.dot_dimension_numbers<[1], [0], [0], [1], [0, 0, 1, 1], [], []>} : vector<8x128xf32>, vector<128x384xf32>, vector<8x384xf32> -> vector<8x384xf32>
    %161 = vector.extract_strided_slice %158 {offsets = [0, 0], sizes = [8, 128], strides = [1, 1]} : vector<8x384xf32> to vector<8x128xf32>
    %162 = vector.extract_strided_slice %160 {offsets = [0, 0], sizes = [8, 128], strides = [1, 1]} : vector<8x384xf32> to vector<8x128xf32>
    %163 = arith.addf %161, %162 : vector<8x128xf32>
    %164 = arith.negf %163 : vector<8x128xf32>
    %165 = math.exp %164 : vector<8x128xf32>
    %cst_45 = arith.constant 1.000000e+00 : f32
    %166 = vector.broadcast %cst_45 : f32 to vector<8x128xf32>
    %167 = arith.addf %166, %165 : vector<8x128xf32>
    %168 = arith.divf %166, %167 : vector<8x128xf32>
    %169 = vector.extract_strided_slice %158 {offsets = [0, 128], sizes = [8, 128], strides = [1, 1]} : vector<8x384xf32> to vector<8x128xf32>
    %170 = vector.extract_strided_slice %160 {offsets = [0, 128], sizes = [8, 128], strides = [1, 1]} : vector<8x384xf32> to vector<8x128xf32>
    %171 = arith.addf %169, %170 : vector<8x128xf32>
    %172 = arith.negf %171 : vector<8x128xf32>
    %173 = math.exp %172 : vector<8x128xf32>
    %cst_46 = arith.constant 1.000000e+00 : f32
    %174 = vector.broadcast %cst_46 : f32 to vector<8x128xf32>
    %175 = arith.addf %174, %173 : vector<8x128xf32>
    %176 = arith.divf %174, %175 : vector<8x128xf32>
    %177 = vector.extract_strided_slice %158 {offsets = [0, 256], sizes = [8, 128], strides = [1, 1]} : vector<8x384xf32> to vector<8x128xf32>
    %178 = vector.extract_strided_slice %160 {offsets = [0, 256], sizes = [8, 128], strides = [1, 1]} : vector<8x384xf32> to vector<8x128xf32>
    %179 = arith.addf %178, %11 : vector<8x128xf32>
    %180 = arith.mulf %168, %179 : vector<8x128xf32>
    %181 = arith.addf %177, %180 : vector<8x128xf32>
    %182 = math.tanh %181 : vector<8x128xf32>
    %cst_47 = arith.constant 1.000000e+00 : f32
    %183 = vector.broadcast %cst_47 : f32 to vector<8x128xf32>
    %184 = arith.subf %183, %176 : vector<8x128xf32>
    %185 = arith.mulf %184, %182 : vector<8x128xf32>
    %186 = arith.mulf %176, %101 : vector<8x128xf32>
    %187 = arith.addf %185, %186 : vector<8x128xf32>
    %188 = vector.broadcast %159 : i32 to vector<8x1xi32>
    %189 = arith.cmpi slt, %188, %3 : vector<8x1xi32>
    %190 = vector.shape_cast %189 : vector<8x1xi1> to vector<8x1xi1>
    %191 = vector.broadcast %190 : vector<8x1xi1> to vector<8x128xi1>
    %192 = arith.select %191, %187, %101 : vector<8x128xi1>, vector<8x128xf32>
    %193 = vector.shape_cast %189 : vector<8x1xi1> to vector<8x1xi1>
    %194 = vector.broadcast %193 : vector<8x1xi1> to vector<8x128xi1>
    %195 = arith.select %194, %187, %12 : vector<8x128xi1>, vector<8x128xf32>
    %196 = arith.index_cast %154 : i32 to index
    %c0_48 = arith.constant 0 : index
    %c0_49 = arith.constant 0 : index
    %197 = vector.load %arg9[%196, %c0_48, %c0_49] : memref<4x8x128xf32, #tpu.memory_space<vmem>>, vector<1x8x128xf32>
    %198 = vector.shape_cast %197 : vector<1x8x128xf32> to vector<8x128xf32>
    %199 = vector.shape_cast %195 : vector<8x128xf32> to vector<1x8x128xf32>
    tpu.vector_store %arg9[%196, %c0_48, %c0_49], %199 {strides = array<i32>} : memref<4x8x128xf32, #tpu.memory_space<vmem>>, vector<1x8x128xf32>,
    %c2_i32 = arith.constant 2 : i32
    %200 = arith.index_cast %c2_i32 : i32 to index
    %c0_50 = arith.constant 0 : index
    %c0_51 = arith.constant 0 : index
    %201 = vector.load %arg2[%200, %c0_50, %c0_51] : memref<4x8x384xbf16, #tpu.memory_space<vmem>>, vector<1x8x384xbf16>
    %202 = vector.shape_cast %201 : vector<1x8x384xbf16> to vector<8x384xbf16>
    %203 = arith.extf %202 : vector<8x384xbf16> to vector<8x384xf32>
    %204 = arith.addi %13, %c2_i32 : i32
    %cst_52 = arith.constant dense<0.000000e+00> : vector<8x384xf32>
    %205 = tpu.matmul %146, %4, %cst_52 {dimension_numbers = #tpu.dot_dimension_numbers<[1], [0], [0], [1], [0, 0, 1, 1], [], []>} : vector<8x128xf32>, vector<128x384xf32>, vector<8x384xf32> -> vector<8x384xf32>
    %206 = vector.extract_strided_slice %203 {offsets = [0, 0], sizes = [8, 128], strides = [1, 1]} : vector<8x384xf32> to vector<8x128xf32>
    %207 = vector.extract_strided_slice %205 {offsets = [0, 0], sizes = [8, 128], strides = [1, 1]} : vector<8x384xf32> to vector<8x128xf32>
    %208 = arith.addf %206, %207 : vector<8x128xf32>
    %209 = arith.negf %208 : vector<8x128xf32>
    %210 = math.exp %209 : vector<8x128xf32>
    %cst_53 = arith.constant 1.000000e+00 : f32
    %211 = vector.broadcast %cst_53 : f32 to vector<8x128xf32>
    %212 = arith.addf %211, %210 : vector<8x128xf32>
    %213 = arith.divf %211, %212 : vector<8x128xf32>
    %214 = vector.extract_strided_slice %203 {offsets = [0, 128], sizes = [8, 128], strides = [1, 1]} : vector<8x384xf32> to vector<8x128xf32>
    %215 = vector.extract_strided_slice %205 {offsets = [0, 128], sizes = [8, 128], strides = [1, 1]} : vector<8x384xf32> to vector<8x128xf32>
    %216 = arith.addf %214, %215 : vector<8x128xf32>
    %217 = arith.negf %216 : vector<8x128xf32>
    %218 = math.exp %217 : vector<8x128xf32>
    %cst_54 = arith.constant 1.000000e+00 : f32
    %219 = vector.broadcast %cst_54 : f32 to vector<8x128xf32>
    %220 = arith.addf %219, %218 : vector<8x128xf32>
    %221 = arith.divf %219, %220 : vector<8x128xf32>
    %222 = vector.extract_strided_slice %203 {offsets = [0, 256], sizes = [8, 128], strides = [1, 1]} : vector<8x384xf32> to vector<8x128xf32>
    %223 = vector.extract_strided_slice %205 {offsets = [0, 256], sizes = [8, 128], strides = [1, 1]} : vector<8x384xf32> to vector<8x128xf32>
    %224 = arith.addf %223, %8 : vector<8x128xf32>
    %225 = arith.mulf %213, %224 : vector<8x128xf32>
    %226 = arith.addf %222, %225 : vector<8x128xf32>
    %227 = math.tanh %226 : vector<8x128xf32>
    %cst_55 = arith.constant 1.000000e+00 : f32
    %228 = vector.broadcast %cst_55 : f32 to vector<8x128xf32>
    %229 = arith.subf %228, %221 : vector<8x128xf32>
    %230 = arith.mulf %229, %227 : vector<8x128xf32>
    %231 = arith.mulf %221, %146 : vector<8x128xf32>
    %232 = arith.addf %230, %231 : vector<8x128xf32>
    %233 = vector.broadcast %204 : i32 to vector<8x1xi32>
    %234 = arith.cmpi slt, %233, %3 : vector<8x1xi32>
    %235 = vector.shape_cast %234 : vector<8x1xi1> to vector<8x1xi1>
    %236 = vector.broadcast %235 : vector<8x1xi1> to vector<8x128xi1>
    %237 = arith.select %236, %232, %146 : vector<8x128xi1>, vector<8x128xf32>
    %238 = vector.shape_cast %234 : vector<8x1xi1> to vector<8x1xi1>
    %239 = vector.broadcast %238 : vector<8x1xi1> to vector<8x128xi1>
    %240 = arith.select %239, %232, %12 : vector<8x128xi1>, vector<8x128xf32>
    %241 = arith.index_cast %c2_i32 : i32 to index
    %c0_56 = arith.constant 0 : index
    %c0_57 = arith.constant 0 : index
    %242 = vector.load %arg8[%241, %c0_56, %c0_57] : memref<4x8x128xf32, #tpu.memory_space<vmem>>, vector<1x8x128xf32>
    %243 = vector.shape_cast %242 : vector<1x8x128xf32> to vector<8x128xf32>
    %244 = vector.shape_cast %240 : vector<8x128xf32> to vector<1x8x128xf32>
    tpu.vector_store %arg8[%241, %c0_56, %c0_57], %244 {strides = array<i32>} : memref<4x8x128xf32, #tpu.memory_space<vmem>>, vector<1x8x128xf32>,
    %c3_i32_58 = arith.constant 3 : i32
    %245 = arith.subi %c3_i32_58, %c2_i32 : i32
    %246 = arith.index_cast %245 : i32 to index
    %c0_59 = arith.constant 0 : index
    %c0_60 = arith.constant 0 : index
    %247 = vector.load %arg3[%246, %c0_59, %c0_60] : memref<4x8x384xbf16, #tpu.memory_space<vmem>>, vector<1x8x384xbf16>
    %248 = vector.shape_cast %247 : vector<1x8x384xbf16> to vector<8x384xbf16>
    %249 = arith.extf %248 : vector<8x384xbf16> to vector<8x384xf32>
    %250 = arith.addi %15, %245 : i32
    %cst_61 = arith.constant dense<0.000000e+00> : vector<8x384xf32>
    %251 = tpu.matmul %192, %5, %cst_61 {dimension_numbers = #tpu.dot_dimension_numbers<[1], [0], [0], [1], [0, 0, 1, 1], [], []>} : vector<8x128xf32>, vector<128x384xf32>, vector<8x384xf32> -> vector<8x384xf32>
    %252 = vector.extract_strided_slice %249 {offsets = [0, 0], sizes = [8, 128], strides = [1, 1]} : vector<8x384xf32> to vector<8x128xf32>
    %253 = vector.extract_strided_slice %251 {offsets = [0, 0], sizes = [8, 128], strides = [1, 1]} : vector<8x384xf32> to vector<8x128xf32>
    %254 = arith.addf %252, %253 : vector<8x128xf32>
    %255 = arith.negf %254 : vector<8x128xf32>
    %256 = math.exp %255 : vector<8x128xf32>
    %cst_62 = arith.constant 1.000000e+00 : f32
    %257 = vector.broadcast %cst_62 : f32 to vector<8x128xf32>
    %258 = arith.addf %257, %256 : vector<8x128xf32>
    %259 = arith.divf %257, %258 : vector<8x128xf32>
    %260 = vector.extract_strided_slice %249 {offsets = [0, 128], sizes = [8, 128], strides = [1, 1]} : vector<8x384xf32> to vector<8x128xf32>
    %261 = vector.extract_strided_slice %251 {offsets = [0, 128], sizes = [8, 128], strides = [1, 1]} : vector<8x384xf32> to vector<8x128xf32>
    %262 = arith.addf %260, %261 : vector<8x128xf32>
    %263 = arith.negf %262 : vector<8x128xf32>
    %264 = math.exp %263 : vector<8x128xf32>
    %cst_63 = arith.constant 1.000000e+00 : f32
    %265 = vector.broadcast %cst_63 : f32 to vector<8x128xf32>
    %266 = arith.addf %265, %264 : vector<8x128xf32>
    %267 = arith.divf %265, %266 : vector<8x128xf32>
    %268 = vector.extract_strided_slice %249 {offsets = [0, 256], sizes = [8, 128], strides = [1, 1]} : vector<8x384xf32> to vector<8x128xf32>
    %269 = vector.extract_strided_slice %251 {offsets = [0, 256], sizes = [8, 128], strides = [1, 1]} : vector<8x384xf32> to vector<8x128xf32>
    %270 = arith.addf %269, %11 : vector<8x128xf32>
    %271 = arith.mulf %259, %270 : vector<8x128xf32>
    %272 = arith.addf %268, %271 : vector<8x128xf32>
    %273 = math.tanh %272 : vector<8x128xf32>
    %cst_64 = arith.constant 1.000000e+00 : f32
    %274 = vector.broadcast %cst_64 : f32 to vector<8x128xf32>
    %275 = arith.subf %274, %267 : vector<8x128xf32>
    %276 = arith.mulf %275, %273 : vector<8x128xf32>
    %277 = arith.mulf %267, %192 : vector<8x128xf32>
    %278 = arith.addf %276, %277 : vector<8x128xf32>
    %279 = vector.broadcast %250 : i32 to vector<8x1xi32>
    %280 = arith.cmpi slt, %279, %3 : vector<8x1xi32>
    %281 = vector.shape_cast %280 : vector<8x1xi1> to vector<8x1xi1>
    %282 = vector.broadcast %281 : vector<8x1xi1> to vector<8x128xi1>
    %283 = arith.select %282, %278, %192 : vector<8x128xi1>, vector<8x128xf32>
    %284 = vector.shape_cast %280 : vector<8x1xi1> to vector<8x1xi1>
    %285 = vector.broadcast %284 : vector<8x1xi1> to vector<8x128xi1>
    %286 = arith.select %285, %278, %12 : vector<8x128xi1>, vector<8x128xf32>
    %287 = arith.index_cast %245 : i32 to index
    %c0_65 = arith.constant 0 : index
    %c0_66 = arith.constant 0 : index
    %288 = vector.load %arg9[%287, %c0_65, %c0_66] : memref<4x8x128xf32, #tpu.memory_space<vmem>>, vector<1x8x128xf32>
    %289 = vector.shape_cast %288 : vector<1x8x128xf32> to vector<8x128xf32>
    %290 = vector.shape_cast %286 : vector<8x128xf32> to vector<1x8x128xf32>
    tpu.vector_store %arg9[%287, %c0_65, %c0_66], %290 {strides = array<i32>} : memref<4x8x128xf32, #tpu.memory_space<vmem>>, vector<1x8x128xf32>,
    %c3_i32_67 = arith.constant 3 : i32
    %291 = arith.index_cast %c3_i32_67 : i32 to index
    %c0_68 = arith.constant 0 : index
    %c0_69 = arith.constant 0 : index
    %292 = vector.load %arg2[%291, %c0_68, %c0_69] : memref<4x8x384xbf16, #tpu.memory_space<vmem>>, vector<1x8x384xbf16>
    %293 = vector.shape_cast %292 : vector<1x8x384xbf16> to vector<8x384xbf16>
    %294 = arith.extf %293 : vector<8x384xbf16> to vector<8x384xf32>
    %295 = arith.addi %13, %c3_i32_67 : i32
    %cst_70 = arith.constant dense<0.000000e+00> : vector<8x384xf32>
    %296 = tpu.matmul %237, %4, %cst_70 {dimension_numbers = #tpu.dot_dimension_numbers<[1], [0], [0], [1], [0, 0, 1, 1], [], []>} : vector<8x128xf32>, vector<128x384xf32>, vector<8x384xf32> -> vector<8x384xf32>
    %297 = vector.extract_strided_slice %294 {offsets = [0, 0], sizes = [8, 128], strides = [1, 1]} : vector<8x384xf32> to vector<8x128xf32>
    %298 = vector.extract_strided_slice %296 {offsets = [0, 0], sizes = [8, 128], strides = [1, 1]} : vector<8x384xf32> to vector<8x128xf32>
    %299 = arith.addf %297, %298 : vector<8x128xf32>
    %300 = arith.negf %299 : vector<8x128xf32>
    %301 = math.exp %300 : vector<8x128xf32>
    %cst_71 = arith.constant 1.000000e+00 : f32
    %302 = vector.broadcast %cst_71 : f32 to vector<8x128xf32>
    %303 = arith.addf %302, %301 : vector<8x128xf32>
    %304 = arith.divf %302, %303 : vector<8x128xf32>
    %305 = vector.extract_strided_slice %294 {offsets = [0, 128], sizes = [8, 128], strides = [1, 1]} : vector<8x384xf32> to vector<8x128xf32>
    %306 = vector.extract_strided_slice %296 {offsets = [0, 128], sizes = [8, 128], strides = [1, 1]} : vector<8x384xf32> to vector<8x128xf32>
    %307 = arith.addf %305, %306 : vector<8x128xf32>
    %308 = arith.negf %307 : vector<8x128xf32>
    %309 = math.exp %308 : vector<8x128xf32>
    %cst_72 = arith.constant 1.000000e+00 : f32
    %310 = vector.broadcast %cst_72 : f32 to vector<8x128xf32>
    %311 = arith.addf %310, %309 : vector<8x128xf32>
    %312 = arith.divf %310, %311 : vector<8x128xf32>
    %313 = vector.extract_strided_slice %294 {offsets = [0, 256], sizes = [8, 128], strides = [1, 1]} : vector<8x384xf32> to vector<8x128xf32>
    %314 = vector.extract_strided_slice %296 {offsets = [0, 256], sizes = [8, 128], strides = [1, 1]} : vector<8x384xf32> to vector<8x128xf32>
    %315 = arith.addf %314, %8 : vector<8x128xf32>
    %316 = arith.mulf %304, %315 : vector<8x128xf32>
    %317 = arith.addf %313, %316 : vector<8x128xf32>
    %318 = math.tanh %317 : vector<8x128xf32>
    %cst_73 = arith.constant 1.000000e+00 : f32
    %319 = vector.broadcast %cst_73 : f32 to vector<8x128xf32>
    %320 = arith.subf %319, %312 : vector<8x128xf32>
    %321 = arith.mulf %320, %318 : vector<8x128xf32>
    %322 = arith.mulf %312, %237 : vector<8x128xf32>
    %323 = arith.addf %321, %322 : vector<8x128xf32>
    %324 = vector.broadcast %295 : i32 to vector<8x1xi32>
    %325 = arith.cmpi slt, %324, %3 : vector<8x1xi32>
    %326 = vector.shape_cast %325 : vector<8x1xi1> to vector<8x1xi1>
    %327 = vector.broadcast %326 : vector<8x1xi1> to vector<8x128xi1>
    %328 = arith.select %327, %323, %237 : vector<8x128xi1>, vector<8x128xf32>
    %329 = vector.shape_cast %325 : vector<8x1xi1> to vector<8x1xi1>
    %330 = vector.broadcast %329 : vector<8x1xi1> to vector<8x128xi1>
    %331 = arith.select %330, %323, %12 : vector<8x128xi1>, vector<8x128xf32>
    %332 = arith.index_cast %c3_i32_67 : i32 to index
    %c0_74 = arith.constant 0 : index
    %c0_75 = arith.constant 0 : index
    %333 = vector.load %arg8[%332, %c0_74, %c0_75] : memref<4x8x128xf32, #tpu.memory_space<vmem>>, vector<1x8x128xf32>
    %334 = vector.shape_cast %333 : vector<1x8x128xf32> to vector<8x128xf32>
    %335 = vector.shape_cast %331 : vector<8x128xf32> to vector<1x8x128xf32>
    tpu.vector_store %arg8[%332, %c0_74, %c0_75], %335 {strides = array<i32>} : memref<4x8x128xf32, #tpu.memory_space<vmem>>, vector<1x8x128xf32>,
    %c3_i32_76 = arith.constant 3 : i32
    %336 = arith.subi %c3_i32_76, %c3_i32_67 : i32
    %337 = arith.index_cast %336 : i32 to index
    %c0_77 = arith.constant 0 : index
    %c0_78 = arith.constant 0 : index
    %338 = vector.load %arg3[%337, %c0_77, %c0_78] : memref<4x8x384xbf16, #tpu.memory_space<vmem>>, vector<1x8x384xbf16>
    %339 = vector.shape_cast %338 : vector<1x8x384xbf16> to vector<8x384xbf16>
    %340 = arith.extf %339 : vector<8x384xbf16> to vector<8x384xf32>
    %341 = arith.addi %15, %336 : i32
    %cst_79 = arith.constant dense<0.000000e+00> : vector<8x384xf32>
    %342 = tpu.matmul %283, %5, %cst_79 {dimension_numbers = #tpu.dot_dimension_numbers<[1], [0], [0], [1], [0, 0, 1, 1], [], []>} : vector<8x128xf32>, vector<128x384xf32>, vector<8x384xf32> -> vector<8x384xf32>
    %343 = vector.extract_strided_slice %340 {offsets = [0, 0], sizes = [8, 128], strides = [1, 1]} : vector<8x384xf32> to vector<8x128xf32>
    %344 = vector.extract_strided_slice %342 {offsets = [0, 0], sizes = [8, 128], strides = [1, 1]} : vector<8x384xf32> to vector<8x128xf32>
    %345 = arith.addf %343, %344 : vector<8x128xf32>
    %346 = arith.negf %345 : vector<8x128xf32>
    %347 = math.exp %346 : vector<8x128xf32>
    %cst_80 = arith.constant 1.000000e+00 : f32
    %348 = vector.broadcast %cst_80 : f32 to vector<8x128xf32>
    %349 = arith.addf %348, %347 : vector<8x128xf32>
    %350 = arith.divf %348, %349 : vector<8x128xf32>
    %351 = vector.extract_strided_slice %340 {offsets = [0, 128], sizes = [8, 128], strides = [1, 1]} : vector<8x384xf32> to vector<8x128xf32>
    %352 = vector.extract_strided_slice %342 {offsets = [0, 128], sizes = [8, 128], strides = [1, 1]} : vector<8x384xf32> to vector<8x128xf32>
    %353 = arith.addf %351, %352 : vector<8x128xf32>
    %354 = arith.negf %353 : vector<8x128xf32>
    %355 = math.exp %354 : vector<8x128xf32>
    %cst_81 = arith.constant 1.000000e+00 : f32
    %356 = vector.broadcast %cst_81 : f32 to vector<8x128xf32>
    %357 = arith.addf %356, %355 : vector<8x128xf32>
    %358 = arith.divf %356, %357 : vector<8x128xf32>
    %359 = vector.extract_strided_slice %340 {offsets = [0, 256], sizes = [8, 128], strides = [1, 1]} : vector<8x384xf32> to vector<8x128xf32>
    %360 = vector.extract_strided_slice %342 {offsets = [0, 256], sizes = [8, 128], strides = [1, 1]} : vector<8x384xf32> to vector<8x128xf32>
    %361 = arith.addf %360, %11 : vector<8x128xf32>
    %362 = arith.mulf %350, %361 : vector<8x128xf32>
    %363 = arith.addf %359, %362 : vector<8x128xf32>
    %364 = math.tanh %363 : vector<8x128xf32>
    %cst_82 = arith.constant 1.000000e+00 : f32
    %365 = vector.broadcast %cst_82 : f32 to vector<8x128xf32>
    %366 = arith.subf %365, %358 : vector<8x128xf32>
    %367 = arith.mulf %366, %364 : vector<8x128xf32>
    %368 = arith.mulf %358, %283 : vector<8x128xf32>
    %369 = arith.addf %367, %368 : vector<8x128xf32>
    %370 = vector.broadcast %341 : i32 to vector<8x1xi32>
    %371 = arith.cmpi slt, %370, %3 : vector<8x1xi32>
    %372 = vector.shape_cast %371 : vector<8x1xi1> to vector<8x1xi1>
    %373 = vector.broadcast %372 : vector<8x1xi1> to vector<8x128xi1>
    %374 = arith.select %373, %369, %283 : vector<8x128xi1>, vector<8x128xf32>
    %375 = vector.shape_cast %371 : vector<8x1xi1> to vector<8x1xi1>
    %376 = vector.broadcast %375 : vector<8x1xi1> to vector<8x128xi1>
    %377 = arith.select %376, %369, %12 : vector<8x128xi1>, vector<8x128xf32>
    %378 = arith.index_cast %336 : i32 to index
    %c0_83 = arith.constant 0 : index
    %c0_84 = arith.constant 0 : index
    %379 = vector.load %arg9[%378, %c0_83, %c0_84] : memref<4x8x128xf32, #tpu.memory_space<vmem>>, vector<1x8x128xf32>
    %380 = vector.shape_cast %379 : vector<1x8x128xf32> to vector<8x128xf32>
    %381 = vector.shape_cast %377 : vector<8x128xf32> to vector<1x8x128xf32>
    tpu.vector_store %arg9[%378, %c0_83, %c0_84], %381 {strides = array<i32>} : memref<4x8x128xf32, #tpu.memory_space<vmem>>, vector<1x8x128xf32>,
    %c4_i32_85 = arith.constant 4 : i32
    %c0_86 = arith.constant 0 : index
    %c0_87 = arith.constant 0 : index
    %382 = vector.load %arg12[%c0_86, %c0_87] : memref<8x128xf32, #tpu.memory_space<vmem>>, vector<8x128xf32>
    tpu.vector_store %arg12[%c0_86, %c0_87], %328 {strides = array<i32>} : memref<8x128xf32, #tpu.memory_space<vmem>>, vector<8x128xf32>,
    %c0_88 = arith.constant 0 : index
    %c0_89 = arith.constant 0 : index
    %383 = vector.load %arg13[%c0_88, %c0_89] : memref<8x128xf32, #tpu.memory_space<vmem>>, vector<8x128xf32>
    tpu.vector_store %arg13[%c0_88, %c0_89], %374 {strides = array<i32>} : memref<8x128xf32, #tpu.memory_space<vmem>>, vector<8x128xf32>,
    %c0_90 = arith.constant 0 : index
    %c0_91 = arith.constant 0 : index
    %384 = vector.load %arg10[%c0_90, %c0_91] : memref<8x128xf32, #tpu.memory_space<vmem>>, vector<8x128xf32>
    tpu.vector_store %arg10[%c0_90, %c0_91], %328 {strides = array<i32>} : memref<8x128xf32, #tpu.memory_space<vmem>>, vector<8x128xf32>,
    %c0_92 = arith.constant 0 : index
    %c0_93 = arith.constant 0 : index
    %385 = vector.load %arg11[%c0_92, %c0_93] : memref<8x128xf32, #tpu.memory_space<vmem>>, vector<8x128xf32>
    tpu.vector_store %arg11[%c0_92, %c0_93], %374 {strides = array<i32>} : memref<8x128xf32, #tpu.memory_space<vmem>>, vector<8x128xf32>,
    return
  }
  func.func @transform_0(%arg0: i32) -> (i32, i32) {
    %c0_i32 = arith.constant 0 : i32
    %c0_i32_0 = arith.constant 0 : i32
    %c0_i32_1 = arith.constant 0 : i32
    return %c0_i32, %c0_i32_0 : i32, i32
  }
  func.func @transform_1(%arg0: i32) -> (i32, i32, i32) {
    %c0_i32 = arith.constant 0 : i32
    %c0_i32_0 = arith.constant 0 : i32
    %c0_i32_1 = arith.constant 0 : i32
    return %arg0, %c0_i32, %c0_i32_0 : i32, i32, i32
  }
  func.func @transform_2(%arg0: i32) -> (i32, i32, i32) {
    %c1_i32 = arith.constant 1 : i32
    %0 = arith.subi %c1_i32, %arg0 : i32
    %c0_i32 = arith.constant 0 : i32
    %c0_i32_0 = arith.constant 0 : i32
    %c0_i32_1 = arith.constant 0 : i32
    return %0, %c0_i32, %c0_i32_0 : i32, i32, i32
  }
  func.func @transform_3(%arg0: i32) -> (i32, i32) {
    %c0_i32 = arith.constant 0 : i32
    %c0_i32_0 = arith.constant 0 : i32
    %c0_i32_1 = arith.constant 0 : i32
    return %c0_i32, %c0_i32_0 : i32, i32
  }
  func.func @transform_4(%arg0: i32) -> (i32, i32) {
    %c0_i32 = arith.constant 0 : i32
    %c0_i32_0 = arith.constant 0 : i32
    %c0_i32_1 = arith.constant 0 : i32
    return %c0_i32, %c0_i32_0 : i32, i32
  }
  func.func @transform_5(%arg0: i32) -> (i32, i32) {
    %c0_i32 = arith.constant 0 : i32
    %c0_i32_0 = arith.constant 0 : i32
    %c0_i32_1 = arith.constant 0 : i32
    return %c0_i32, %c0_i32_0 : i32, i32
  }
  func.func @transform_6(%arg0: i32) -> (i32, i32) {
    %c0_i32 = arith.constant 0 : i32
    %c0_i32_0 = arith.constant 0 : i32
    %c0_i32_1 = arith.constant 0 : i32
    return %c0_i32, %c0_i32_0 : i32, i32
  }
  func.func @transform_7(%arg0: i32) -> (i32, i32, i32) {
    %c0_i32 = arith.constant 0 : i32
    %c0_i32_0 = arith.constant 0 : i32
    %c0_i32_1 = arith.constant 0 : i32
    return %arg0, %c0_i32, %c0_i32_0 : i32, i32, i32
  }
  func.func @transform_8(%arg0: i32) -> (i32, i32, i32) {
    %c1_i32 = arith.constant 1 : i32
    %0 = arith.subi %c1_i32, %arg0 : i32
    %c0_i32 = arith.constant 0 : i32
    %c0_i32_0 = arith.constant 0 : i32
    %c0_i32_1 = arith.constant 0 : i32
    return %0, %c0_i32, %c0_i32_0 : i32, i32, i32
  }
  func.func @transform_9(%arg0: i32) -> (i32, i32) {
    %c0_i32 = arith.constant 0 : i32
    %c0_i32_0 = arith.constant 0 : i32
    %c0_i32_1 = arith.constant 0 : i32
    return %c0_i32, %c0_i32_0 : i32, i32
  }
  func.func @transform_10(%arg0: i32) -> (i32, i32) {
    %c0_i32 = arith.constant 0 : i32
    %c0_i32_0 = arith.constant 0 : i32
    %c0_i32_1 = arith.constant 0 : i32
    return %c0_i32, %c0_i32_0 : i32, i32
  }
}

</mosaic_0001>

<bundles_post_ra>
// kernel: encoder_forward.1
= control target key start
LH: loop header
LB: loop body
LE: loop exit
PB: predicated region body
PF: predicated region fallthrough
CT: control target
= control target key end

     0   :  { %s2827_s13 = smov 0   ;;  %s4217_s0 = inlined_call_operand.vmem [shape: s32[8,1], index: 0, kind: input, shape index: {}]   ;;  %s4218_s1 = inlined_call_operand.vmem [shape: bf16[8,8,384], index: 1, kind: input, shape index: {}]   ;;  %s4219_s2 = inlined_call_operand.vmem [shape: bf16[8,8,384], index: 2, kind: input, shape index: {}]   ;;  %s4220_s3 = inlined_call_operand.vmem [shape: f32[128,384], index: 3, kind: input, shape index: {}]   ;;  %s4221_s4 = inlined_call_operand.vmem [shape: f32[1,128], index: 4, kind: input, shape index: {}]   ;;  %s4222_s5 = inlined_call_operand.vmem [shape: f32[128,384], index: 5, kind: input, shape index: {}]   ;;  %s4223_s6 = inlined_call_operand.vmem [shape: f32[1,128], index: 6, kind: input, shape index: {}]   ;;  %s4224_s7 = inlined_call_operand.vmem [shape: f32[8,8,128], index: 7, kind: output, shape index: {0}]   ;;  %s4225_s8 = inlined_call_operand.vmem [shape: f32[8,8,128], index: 8, kind: output, shape index: {1}]   ;;  %s4226_s9 = inlined_call_operand.vmem [shape: f32[8,128], index: 9, kind: output, shape index: {2}]   ;;  %s4227_s10 = inlined_call_operand.vmem [shape: f32[8,128], index: 10, kind: output, shape index: {3}]  }
   0x1 LB: > { %4337 = sst [smem:[#allocation4_spill]] %s2766_s13  ;;  %s2096_s14 = sadd.s32 4294967295, %s2766_s13   ;;  %s2766_s13 = sphi %s2827_s13, %s21_s13  }
   0x2   : > { %p2100_p0 = scmp.ge.s32.totalorder %s2766_s13, 1  ;;  %p329_p1 = scmp.lt.s32.totalorder %s2766_s13, 3 }
   0x4   : > { %p330_p2 = pnand %p2100_p0, %p329_p1 }
   0x6   : > { %333 = sbr.rel (%p330_p2) target bundleno = 1095 (0x447), region = 48 }
   0xb   : > { %s2835_s15 = sshll.u32 %s2096_s14, 2  ;;  %s388_s16 = ssub.s32 1, %s2096_s14 }
   0xc   : > { %p382_p3 = scmp.lt.s32.totalorder %s2835_s15, 7  ;;  %s2838_s17 = sshll.u32 %s388_s16, 2 }
   0xd   : > { %p390_p4 = scmp.lt.s32.totalorder %s2838_s17, 7  ;;  %p2109_p5 = scmp.ne.s32.totalorder %s2096_s14, 0 }
   0xe   : > { %s383_s18 = scalar_select %p382_p3, %s2835_s15, 7 }
   0xf   : > { %s391_s19 = scalar_select %p390_p4, %s2838_s17, 7 }
  0x10   : > { %s2566_s20 = smul.u32 12, %s383_s18  ;;  %s2106_s21 = sshll.u32 %s383_s18, 3 }
  0x11   : > { %s2567_s22 = smul.u32 12, %s391_s19  ;;  %s2846_s25 = scalar_lea.vmem %s4224_s7, %s2106_s21 }
  0x12   : > { %s2851_s28 = scalar_lea.vmem %s4218_s1, %s2566_s20  ;;  %s2108_s29 = sshll.u32 %s391_s19, 3 }
  0x13   : > { %s2856_s12 = scalar_lea.vmem %s4219_s2, %s2567_s22  ;;  %s2861_s18 = scalar_lea.vmem %s4225_s8, %s2108_s29 }
  0x14   : > { %414 = sbr.rel (%p2109_p5) target bundleno = 27 (0x1b), region = 52 }
  0x19   : > { %v2768_v0 = vmov 0.0  }
  0x1a   : > { %415 = vst [vmem:[#allocation2] sm:$0xff] %v2768_v0  ;;  %416 = vst [vmem:[#allocation3] sm:$0xff] %v2768_v0 }
  0x1b PF: > { %v2866_v1 = vld [vmem:[%s4220_s3 + $0x170] sm:$0xff]  ;;  %v2871_v2 = vld [vmem:[%s4220_s3 + $0x168] sm:$0xff]  ;;  %v2876_v3 = vld [vmem:[%s4220_s3 + $0x158] sm:$0xff]  ;;  %v4235_v5 = vmov 0.0   ;;  %vm2770_vm0 = vmmov 0   ;;  %v4229_v9 = vmov 0  }
  0x1c   : > { %4338 = vst [vmem:[#allocation5_spill] sm:$0xff] %v2866_v1  ;;  %538 = vmatprep.subr.mxu0 %v2866_v1  ;;  %v2882_v4 = vld [vmem:[%s4220_s3 + $0x150] sm:$0xff]  ;;  %2286 = vmatprep.subr.mxu1 %v4235_v5  ;;  %v2889_v6 = vld [vmem:[%s4220_s3 + $0x140] sm:$0xff]  ;;  %v2896_v7 = vld [vmem:[%s4220_s3 + $0x138] sm:$0xff]  ;;  %s717_s26 = sadd.s32 3, %s2838_s17  ;;  %s1260_s23 = sadd.s32 2, %s2835_s15 }
  0x1d   : > { %539 = vmatpush1.msra.mxu0 %v2871_v2  ;;  %602 = vmatprep.mubr.f32.mxu0 %v4235_v5  ;;  %v2904_v8 = vld [vmem:[%s4220_s3 + $0x128] sm:$0xff]  ;;  %v2911_v10 = vld [vmem:[%s4220_s3 + $0x120] sm:$0xff]  ;;  %v2918_v11 = vld [vmem:[%s4220_s3 + $0x110] sm:$0xff]  ;;  %s898_s20 = sadd.s32 1, %s2835_s15  ;;  %s1079_s19 = sadd.s32 2, %s2838_s17 }
  0x1e   : > { %540 = vmatprep.subr.mxu0 %v2876_v3  ;;  %2318 = vmatprep.mubr.msk.f32.mxu1 %vm2770_vm0, %v4235_v5  ;;  %v2924_v12 = vld [vmem:[%s4220_s3 + $0x108] sm:$0xff]  ;;  %v2930_v13 = vld [vmem:[%s4220_s3 + $0xf8] sm:$0xff]  ;;  %v2936_v14 = vld [vmem:[%s4220_s3 + $0xf0] sm:$0xff] }
  0x1f   : > { %541 = vmatpush1.msra.mxu0 %v2882_v4  ;;  %2580 = vset.pattern.permute.xlu0 %v4229_v9  ;;  %v2942_v15 = vld [vmem:[%s4220_s3 + $0xe0] sm:$0xff]  ;;  %v2947_v16 = vld [vmem:[%s4220_s3 + $0x178] sm:$0xff]  ;;  %v2965_v19 = vld [vmem:[%s4220_s3 + $0xc8] sm:$0xff] }
  0x20   : > { %542 = vmatprep.subr.mxu0 %v2889_v6  ;;  %2581 = vset.pattern.permute.xlu1 %v4229_v9  ;;  %v2953_v17 = vld [vmem:[%s4220_s3 + $0xd8] sm:$0xff]  ;;  %v2959_v18 = vld [vmem:[%s4220_s3 + $0x160] sm:$0xff]  ;;  %v2971_v20 = vld [vmem:[%s4220_s3 + $0x148] sm:$0xff] }
  0x21   : > { %543 = vmatpush1.msra.mxu0 %v2896_v7  ;;  %2287 = vmatpush3.msra.mxu1 %v2947_v16  ;;  %v2977_v21 = vld [vmem:[%s4220_s3 + $0xc0] sm:$0xff]  ;;  %v2984_v22 = vld [vmem:[%s4220_s3 + $0xb0] sm:$0xff]  ;;  %v2996_v24 = vld [vmem:[%s4220_s3 + $0xa8] sm:$0xff] }
  0x22   : > { %544 = vmatprep.subr.mxu0 %v2904_v8  ;;  %2288 = vmatprep.subr.mxu1 %v4235_v5  ;;  %v2990_v23 = vld [vmem:[%s4220_s3 + $0x130] sm:$0xff]  ;;  %v3003_v25 = vld [vmem:[%s4220_s3 + $0x98] sm:$0xff]  ;;  %v3022_v28 = vld [vmem:[%s4220_s3 + $0x80] sm:$0xff] }
  0x23   : > { %545 = vmatpush1.msra.mxu0 %v2911_v10  ;;  %2289 = vmatpush3.msra.mxu1 %v2959_v18  ;;  %v3009_v26 = vld [vmem:[%s4220_s3 + $0x118] sm:$0xff]  ;;  %v3015_v27 = vld [vmem:[%s4220_s3 + $0x90] sm:$0xff]  ;;  %v3028_v29 = vld [vmem:[%s4220_s3 + $0x100] sm:$0xff] }
  0x24   : > { %546 = vmatprep.subr.mxu0 %v2918_v11  ;;  %2290 = vmatprep.subr.mxu1 %v4235_v5  ;;  %v3034_v30 = vld [vmem:[%s4220_s3 + $0x78] sm:$0xff]  ;;  %v3041_v31 = vld [vmem:[%s4220_s3 + $0x68] sm:$0xff]  ;;  %v3053_v33 = vld [vmem:[%s4220_s3 + $0x60] sm:$0xff] }
  0x25   : > { %547 = vmatpush1.msra.mxu0 %v2924_v12  ;;  %2291 = vmatpush3.msra.mxu1 %v2971_v20  ;;  %4339 = vst [vmem:[#allocation6_spill] sm:$0xff] %v3041_v31  ;;  %v3047_v32 = vld [vmem:[%s4220_s3 + $0xe8] sm:$0xff]  ;;  %4340 = vst [vmem:[#allocation7_spill] sm:$0xff] %v3053_v33  ;;  %v3060_v34 = vld [vmem:[%s4220_s3 + $0x50] sm:$0xff] }
  0x26   : > { %548 = vmatprep.subr.mxu0 %v2930_v13  ;;  %2292 = vmatprep.subr.mxu1 %v4235_v5  ;;  %4341 = vst [vmem:[#allocation8_spill] sm:$0xff] %v3060_v34  ;;  %v3066_v35 = vld [vmem:[%s4220_s3 + $0xd0] sm:$0xff]  ;;  %v3072_v36 = vld [vmem:[%s4220_s3 + $0x48] sm:$0xff]  ;;  %v3079_v37 = vld [vmem:[%s4220_s3 + $0x38] sm:$0xff] }
  0x27   : > { %549 = vmatpush1.msra.mxu0 %v2936_v14  ;;  %2293 = vmatpush3.msra.mxu1 %v2990_v23  ;;  %4342 = vst [vmem:[#allocation9_spill] sm:$0xff] %v3072_v36  ;;  %4343 = vst [vmem:[#allocation10_spill] sm:$0xff] %v3079_v37  ;;  %v3085_v38 = vld [vmem:[%s4220_s3 + $0xb8] sm:$0xff]  ;;  %v3091_v39 = vld [vmem:[%s4220_s3 + $0x30] sm:$0xff] }
  0x28   : > { %550 = vmatprep.subr.mxu0 %v2942_v15  ;;  %2294 = vmatprep.subr.mxu1 %v4235_v5  ;;  %4344 = vst [vmem:[#allocation11_spill] sm:$0xff] %v3091_v39  ;;  %v3098_v40 = vld [vmem:[%s4220_s3 + $0x20] sm:$0xff]  ;;  %v3110_v42 = vld [vmem:[%s4220_s3 + $0x18] sm:$0xff]  ;;  %v3117_v43 = vld [vmem:[%s4220_s3 + $0x8] sm:$0xff] }
  0x29   : > { %551 = vmatpush1.msra.mxu0 %v2953_v17  ;;  %2295 = vmatpush3.msra.mxu1 %v3009_v26  ;;  %4345 = vst [vmem:[#allocation12_spill] sm:$0xff] %v3098_v40  ;;  %v3104_v41 = vld [vmem:[%s4220_s3 + $0xa0] sm:$0xff]  ;;  %4346 = vst [vmem:[#allocation13_spill] sm:$0xff] %v3110_v42  ;;  %v3123_v44 = vld [vmem:[%s4220_s3 + $0x88] sm:$0xff] }
  0x2a   : > { %552 = vmatprep.subr.mxu0 %v2965_v19  ;;  %2296 = vmatprep.subr.mxu1 %v4235_v5  ;;  %4347 = vst [vmem:[#allocation14_spill] sm:$0xff] %v3117_v43  ;;  %v3129_v45 = vld [vmem:[%s4220_s3] sm:$0xff]  ;;  %v3138_v47 = vld [vmem:[%s4222_s5 + $0x170] sm:$0xff]  ;;  %v3145_v48 = vld [vmem:[%s4222_s5 + $0x168] sm:$0xff] }
  0x2b   : > { %553 = vmatpush1.msra.mxu0 %v2977_v21  ;;  %2297 = vmatpush3.msra.mxu1 %v3028_v29  ;;  %4348 = vst [vmem:[#allocation15_spill] sm:$0xff] %v3129_v45  ;;  %v3133_v46 = vld [vmem:[#allocation2] sm:$0xff]  ;;  %4349 = vst [vmem:[#allocation16_spill] sm:$0xff] %v3138_v47  ;;  %v3151_v49 = vld [vmem:[%s4220_s3 + $0x70] sm:$0xff] }
  0x2c   : > { %554 = vmatprep.subr.mxu0 %v2984_v22  ;;  %2298 = vmatprep.subr.mxu1 %v4235_v5  ;;  %4350 = vst [vmem:[#allocation17_spill] sm:$0xff] %v3151_v49  ;;  %v3157_v50 = vld [vmem:[%s4222_s5 + $0x158] sm:$0xff]  ;;  %v3165_v51 = vld [vmem:[%s4222_s5 + $0x150] sm:$0xff]  ;;  %v3176_v53 = vld [vmem:[%s4222_s5 + $0x140] sm:$0xff] }
  0x2d   : > { %555 = vmatpush1.msra.mxu0 %v2996_v24  ;;  %2299 = vmatpush3.msra.mxu1 %v3047_v32  ;;  %4351 = vst [vmem:[#allocation18_spill] sm:$0xff] %v3165_v51  ;;  %v3170_v52 = vld [vmem:[%s4220_s3 + $0x58] sm:$0xff]  ;;  %4353 = vst [vmem:[#allocation20_spill] sm:$0xff] %v3176_v53  ;;  %v3189_v55 = vld [vmem:[%s4220_s3 + $0x40] sm:$0xff] }
  0x2e   : > { %556 = vmatprep.subr.mxu0 %v3003_v25  ;;  %2300 = vmatprep.subr.mxu1 %v4235_v5  ;;  %4352 = vst [vmem:[#allocation19_spill] sm:$0xff] %v3170_v52  ;;  %v3183_v54 = vld [vmem:[%s4222_s5 + $0x138] sm:$0xff]  ;;  %4355 = vst [vmem:[#allocation22_spill] sm:$0xff] %v3189_v55  ;;  %v3195_v56 = vld [vmem:[%s4222_s5 + $0x128] sm:$0xff] }
  0x2f   : > { %557 = vmatpush1.msra.mxu0 %v3015_v27  ;;  %2301 = vmatpush3.msra.mxu1 %v3066_v35  ;;  %4354 = vst [vmem:[#allocation21_spill] sm:$0xff] %v3183_v54  ;;  %4356 = vst [vmem:[#allocation23_spill] sm:$0xff] %v3195_v56  ;;  %v3202_v57 = vld [vmem:[%s4222_s5 + $0x120] sm:$0xff]  ;;  %v3208_v58 = vld [vmem:[%s4220_s3 + $0x28] sm:$0xff] }
  0x30   : > { %558 = vmatprep.subr.mxu0 %v3022_v28  ;;  %2302 = vmatprep.subr.mxu1 %v4235_v5  ;;  %4357 = vst [vmem:[#allocation24_spill] sm:$0xff] %v3202_v57  ;;  %4358 = vst [vmem:[#allocation25_spill] sm:$0xff] %v3208_v58  ;;  %v3214_v59 = vld [vmem:[%s4222_s5 + $0x110] sm:$0xff]  ;;  %v3221_v60 = vld [vmem:[%s4222_s5 + $0x108] sm:$0xff] }
  0x31   : > { %559 = vmatpush1.msra.mxu0 %v3034_v30  ;;  %2303 = vmatpush3.msra.mxu1 %v3085_v38  ;;  %4359 = vst [vmem:[#allocation26_spill] sm:$0xff] %v3214_v59  ;;  %4360 = vst [vmem:[#allocation27_spill] sm:$0xff] %v3221_v60  ;;  %v3227_v61 = vld [vmem:[%s4220_s3 + $0x10] sm:$0xff]  ;;  %v3233_v62 = vld [vmem:[%s4222_s5 + $0xf8] sm:$0xff] }
  0x32   : > { %560 = vmatprep.subr.mxu0 %v3041_v31  ;;  %2304 = vmatprep.subr.mxu1 %v4235_v5  ;;  %4361 = vst [vmem:[#allocation28_spill] sm:$0xff] %v3227_v61  ;;  %4362 = vst [vmem:[#allocation29_spill] sm:$0xff] %v3233_v62  ;;  %v3240_v63 = vld [vmem:[%s4222_s5 + $0xf0] sm:$0xff]  ;;  %v3247_v0 = vld [vmem:[%s4222_s5 + $0xe0] sm:$0xff] }
  0x33   : > { %561 = vmatpush1.msra.mxu0 %v3053_v33  ;;  %2305 = vmatpush3.msra.mxu1 %v3104_v41  ;;  %4363 = vst [vmem:[#allocation30_spill] sm:$0xff] %v3240_v63  ;;  %4364 = vst [vmem:[#allocation31_spill] sm:$0xff] %v3247_v0  ;;  %v3254_v9 = vld [vmem:[%s4222_s5 + $0xd8] sm:$0xff] }
  0x34   : > { %562 = vmatprep.subr.mxu0 %v3060_v34  ;;  %2306 = vmatprep.subr.mxu1 %v4235_v5  ;;  %4365 = vst [vmem:[#allocation32_spill] sm:$0xff] %v3254_v9 }
  0x35   : > { %563 = vmatpush1.msra.mxu0 %v3072_v36  ;;  %2307 = vmatpush3.msra.mxu1 %v3123_v44 }
  0x36   : > { %564 = vmatprep.subr.mxu0 %v3079_v37  ;;  %2308 = vmatprep.subr.mxu1 %v4235_v5 }
  0x37   : > { %565 = vmatpush1.msra.mxu0 %v3091_v39  ;;  %2309 = vmatpush3.msra.mxu1 %v3151_v49 }
  0x38   : > { %566 = vmatprep.subr.mxu0 %v3098_v40  ;;  %2310 = vmatprep.subr.mxu1 %v4235_v5 }
  0x39   : > { %567 = vmatpush1.msra.mxu0 %v3110_v42  ;;  %2311 = vmatpush3.msra.mxu1 %v3170_v52 }
  0x3a   : > { %568 = vmatprep.subr.mxu0 %v3117_v43  ;;  %2312 = vmatprep.subr.mxu1 %v4235_v5 }
  0x3b   : > { %569 = vmatpush1.msra.mxu0 %v3129_v45  ;;  %2313 = vmatpush3.msra.mxu1 %v3189_v55 }
  0x3c   : > { %603 = vmatmul.mubr.f32.vlgmr.msra.gmra.mxu0 %v3133_v46  ;;  %718 = vmatprep.subr.mxu0 %v3138_v47 }
  0x3d   : > { %719 = vmatpush1.msra.mxu0 %v3145_v48  ;;  %2314 = vmatprep.subr.mxu1 %v4235_v5 }
  0x3e   : > { %720 = vmatprep.subr.mxu0 %v3157_v50  ;;  %2315 = vmatpush3.msra.mxu1 %v3208_v58 }
  0x3f   : > { %721 = vmatpush1.msra.mxu0 %v3165_v51  ;;  %2316 = vmatprep.subr.mxu1 %v4235_v5  ;;  %v3442_v51 = vld [vmem:[#allocation3] sm:$0xff] }
  0x40   : > { %722 = vmatprep.subr.mxu0 %v3176_v53  ;;  %2317 = vmatpush3.msra.mxu1 %v3227_v61  ;;  %v701_v53 = vstv %s2835_s15 }
  0x41   : > { %723 = vmatpush1.msra.mxu0 %v3183_v54  ;;  %2321 = vmatprep.subr.mxu1 %v4235_v5  ;;  %v3273_v5 = vld [vmem:[%s4222_s5 + $0xc0] sm:$0xff] }
  0x42   : > { %724 = vmatprep.subr.mxu0 %v3195_v56  ;;  %2319 = vmatmul.mubr.f32.vlgmr.msra.gmra.mxu1 %v3133_v46  ;;  %4367 = vst [vmem:[#allocation34_spill] sm:$0xff] %v3273_v5  ;;  %v3304_v56 = vld [vmem:[%s4222_s5 + $0x98] sm:$0xff]  ;;  %v3323_v54 = vld [vmem:[%s4222_s5 + $0x80] sm:$0xff] }
  0x43   : > { %725 = vmatpush1.msra.mxu0 %v3202_v57  ;;  %v3285_v57 = vld [vmem:[%s4222_s5 + $0xb0] sm:$0xff]  ;;  %4373 = vst [vmem:[#allocation39_spill] sm:$0xff] %v3304_v56  ;;  %4376 = vst [vmem:[#allocation42_spill] sm:$0xff] %v3323_v54 }
  0x44   : > { %726 = vmatprep.subr.mxu0 %v3214_v59  ;;  %v3266_v59 = vld [vmem:[%s4222_s5 + $0xc8] sm:$0xff]  ;;  %4370 = vst [vmem:[#allocation36_spill] sm:$0xff] %v3285_v57 }
  0x45   : > { %727 = vmatpush1.msra.mxu0 %v3221_v60  ;;  %v3260_v60 = vld [vmem:[%s4222_s5 + $0x178] sm:$0xff]  ;;  %4366 = vst [vmem:[#allocation33_spill] sm:$0xff] %v3266_v59 }
  0x46   : > { %728 = vmatprep.subr.mxu0 %v3233_v62  ;;  %v4368_v62 = vmov 0.0   ;;  %2322 = vmatpush3.msra.mxu1 %v3260_v60 }
  0x47   : > { %729 = vmatpush1.msra.mxu0 %v3240_v63  ;;  %782 = vmatprep.mubr.f32.mxu0 %v4368_v62  ;;  %v3279_v63 = vld [vmem:[%s4222_s5 + $0x160] sm:$0xff] }
  0x48   : > { %730 = vmatprep.subr.mxu0 %v3247_v0  ;;  %4369 = vst [vmem:[#allocation35_spill] sm:$0xff] %v3279_v63  ;;  %v3292_v0 = vld [vmem:[%s4222_s5 + $0xa8] sm:$0xff]  ;;  %2323 = vmatprep.subr.mxu1 %v4368_v62 }
  0x49   : > { %731 = vmatpush1.msra.mxu0 %v3254_v9  ;;  %4371 = vst [vmem:[#allocation37_spill] sm:$0xff] %v3292_v0  ;;  %v3298_v9 = vld [vmem:[%s4222_s5 + $0x148] sm:$0xff]  ;;  %2324 = vmatpush3.msra.mxu1 %v3279_v63  ;;  %v3412_v63 = vld [vmem:[%s4222_s5 + $0x18] sm:$0xff] }
  0x4a   : > { %732 = vmatprep.subr.mxu0 %v3266_v59  ;;  %4372 = vst [vmem:[#allocation38_spill] sm:$0xff] %v3298_v9  ;;  %v3311_v59 = vld [vmem:[%s4222_s5 + $0x90] sm:$0xff]  ;;  %2325 = vmatprep.subr.mxu1 %v4368_v62  ;;  %4389 = vst [vmem:[#allocation55_spill] sm:$0xff] %v3412_v63 }
  0x4b   : > { %733 = vmatpush1.msra.mxu0 %v3273_v5  ;;  %4374 = vst [vmem:[#allocation40_spill] sm:$0xff] %v3311_v59  ;;  %v3317_v5 = vld [vmem:[%s4222_s5 + $0x130] sm:$0xff]  ;;  %2326 = vmatpush3.msra.mxu1 %v3298_v9  ;;  %v3342_v9 = vld [vmem:[%s4222_s5 + $0x68] sm:$0xff] }
  0x4c   : > { %734 = vmatprep.subr.mxu0 %v3285_v57  ;;  %4375 = vst [vmem:[#allocation41_spill] sm:$0xff] %v3317_v5  ;;  %v3330_v57 = vld [vmem:[%s4222_s5 + $0x78] sm:$0xff]  ;;  %2327 = vmatprep.subr.mxu1 %v4368_v62  ;;  %4379 = vst [vmem:[#allocation45_spill] sm:$0xff] %v3342_v9 }
  0x4d   : > { %735 = vmatpush1.msra.mxu0 %v3292_v0  ;;  %4377 = vst [vmem:[#allocation43_spill] sm:$0xff] %v3330_v57  ;;  %v3336_v0 = vld [vmem:[%s4222_s5 + $0x118] sm:$0xff]  ;;  %2328 = vmatpush3.msra.mxu1 %v3317_v5  ;;  %v3361_v5 = vld [vmem:[%s4222_s5 + $0x50] sm:$0xff] }
  0x4e   : > { %736 = vmatprep.subr.mxu0 %v3304_v56  ;;  %4378 = vst [vmem:[#allocation44_spill] sm:$0xff] %v3336_v0  ;;  %v3349_v56 = vld [vmem:[%s4222_s5 + $0x60] sm:$0xff]  ;;  %2329 = vmatprep.subr.mxu1 %v4368_v62  ;;  %4382 = vst [vmem:[#allocation48_spill] sm:$0xff] %v3361_v5 }
  0x4f   : > { %737 = vmatpush1.msra.mxu0 %v3311_v59  ;;  %4380 = vst [vmem:[#allocation46_spill] sm:$0xff] %v3349_v56  ;;  %v3355_v59 = vld [vmem:[%s4222_s5 + $0x100] sm:$0xff]  ;;  %2330 = vmatpush3.msra.mxu1 %v3336_v0  ;;  %v3380_v0 = vld [vmem:[%s4222_s5 + $0x38] sm:$0xff] }
  0x50   : > { %738 = vmatprep.subr.mxu0 %v3323_v54  ;;  %4381 = vst [vmem:[#allocation47_spill] sm:$0xff] %v3355_v59  ;;  %v3368_v54 = vld [vmem:[%s4222_s5 + $0x48] sm:$0xff]  ;;  %2331 = vmatprep.subr.mxu1 %v4368_v62  ;;  %4385 = vst [vmem:[#allocation51_spill] sm:$0xff] %v3380_v0 }
  0x51   : > { %739 = vmatpush1.msra.mxu0 %v3330_v57  ;;  %4383 = vst [vmem:[#allocation49_spill] sm:$0xff] %v3368_v54  ;;  %v3374_v57 = vld [vmem:[%s4222_s5 + $0xe8] sm:$0xff]  ;;  %2332 = vmatpush3.msra.mxu1 %v3355_v59  ;;  %v3399_v59 = vld [vmem:[%s4222_s5 + $0x20] sm:$0xff] }
  0x52   : > { %740 = vmatprep.subr.mxu0 %v3342_v9  ;;  %4384 = vst [vmem:[#allocation50_spill] sm:$0xff] %v3374_v57  ;;  %v3387_v9 = vld [vmem:[%s4222_s5 + $0x30] sm:$0xff]  ;;  %2333 = vmatprep.subr.mxu1 %v4368_v62  ;;  %4388 = vst [vmem:[#allocation54_spill] sm:$0xff] %v3399_v59 }
  0x53   : > { %741 = vmatpush1.msra.mxu0 %v3349_v56  ;;  %4386 = vst [vmem:[#allocation52_spill] sm:$0xff] %v3387_v9  ;;  %v3393_v56 = vld [vmem:[%s4222_s5 + $0xd0] sm:$0xff]  ;;  %2334 = vmatpush3.msra.mxu1 %v3374_v57  ;;  %v3432_v57 = vld [vmem:[%s4222_s5] sm:$0xff] }
  0x54   : > { %742 = vmatprep.subr.mxu0 %v3361_v5  ;;  %4387 = vst [vmem:[#allocation53_spill] sm:$0xff] %v3393_v56  ;;  %v3405_v5 = vld [vmem:[%s4217_s0] sm:$0xff]  ;;  %2335 = vmatprep.subr.mxu1 %v4368_v62  ;;  %4392 = vst [vmem:[#allocation58_spill] sm:$0xff] %v3432_v57 }
  0x55   : > { %743 = vmatpush1.msra.mxu0 %v3368_v54  ;;  %v3418_v54 = vld [vmem:[%s4222_s5 + $0xb8] sm:$0xff]  ;;  %2336 = vmatpush3.msra.mxu1 %v3393_v56  ;;  %vm702_vm1 = vcmp.lt.s32.totalorder %v701_v53, %v3405_v5  ;;  %v3450_v56 = vld [vmem:[%s4222_s5 + $0x88] sm:$0xff]  ;;  %v4395_v53 = vmov 0  }
  0x56   : > { %744 = vmatprep.subr.mxu0 %v3380_v0  ;;  %4390 = vst [vmem:[#allocation56_spill] sm:$0xff] %v3418_v54  ;;  %v3425_v0 = vld [vmem:[%s4222_s5 + $0x8] sm:$0xff]  ;;  %2337 = vmatprep.subr.mxu1 %v4368_v62  ;;  %4394 = vst [vmem:[#allocation60_spill] sm:$0xff] %v3450_v56 }
  0x57   : > { %745 = vmatpush1.msra.mxu0 %v3387_v9  ;;  %4391 = vst [vmem:[#allocation57_spill] sm:$0xff] %v3425_v0  ;;  %v3438_v9 = vld [vmem:[%s4222_s5 + $0xa0] sm:$0xff]  ;;  %2338 = vmatpush3.msra.mxu1 %v3418_v54 }
  0x58   : > { %746 = vmatprep.subr.mxu0 %v3399_v59  ;;  %4393 = vst [vmem:[#allocation59_spill] sm:$0xff] %v3438_v9  ;;  %v881_v59 = vstv %s717_s26  ;;  %2339 = vmatprep.subr.mxu1 %v4368_v62  ;;  %s1622_s26 = sadd.s32 3, %s2835_s15 }
  0x59   : > { %747 = vmatpush1.msra.mxu0 %v3412_v63  ;;  %2340 = vmatpush3.msra.mxu1 %v3438_v9  ;;  %v703_v63 = vsel %vm702_vm1, 1, %v4395_v53  ;;  %vm882_vm2 = vcmp.lt.s32.totalorder %v881_v59, %v3405_v5  ;;  %v3471_v9 = vld [vmem:[%s4222_s5 + $0x58] sm:$0xff]  ;;  %v3481_v59 = vld [vmem:[%s4222_s5 + $0x40] sm:$0xff] }
  0x5a   : > { %748 = vmatprep.subr.mxu0 %v3425_v0  ;;  %2341 = vmatprep.subr.mxu1 %v4368_v62  ;;  %v3461_v0 = vld [vmem:[%s4222_s5 + $0x70] sm:$0xff]  ;;  %4397 = vst [vmem:[#allocation62_spill] sm:$0xff] %v3471_v9  ;;  %v883_v54 = vsel %vm882_vm2, 1, %v4395_v53  ;;  %4398 = vst [vmem:[#allocation63_spill] sm:$0xff] %v3481_v59 }
  0x5b   : > { %749 = vmatpush1.msra.mxu0 %v3432_v57  ;;  %4396 = vst [vmem:[#allocation61_spill] sm:$0xff] %v3461_v0  ;;  %2342 = vmatpush3.msra.mxu1 %v3450_v56  ;;  %v1424_v57 = vstv %s1260_s23  ;;  %s1441_s23 = sadd.s32 1, %s2838_s17 }
  0x5c   : > { %783 = vmatmul.mubr.f32.vlgmr.msra.gmra.mxu0 %v3442_v51  ;;  %2353 = vmatprep.mubr.msk.f32.mxu1 %vm2770_vm0, %v4368_v62  ;;  %vm1425_vm3 = vcmp.lt.s32.totalorder %v1424_v57, %v3405_v5  ;;  %v3500_v57 = vld [vmem:[%s4222_s5 + $0x10] sm:$0xff] }
  0x5d   : > { %2343 = vmatprep.subr.mxu1 %v4368_v62  ;;  %705 = vperm.xlu0 %2580, %v703_v63   ;;  %v1786_v63 = vstv %s1622_s26 }
  0x5e   : > { %2344 = vmatpush3.msra.mxu1 %v3461_v0  ;;  %899 = vmatprep.subr.mxu0 %v2866_v1  ;;  %v3491_v1 = vld [vmem:[%s4222_s5 + $0x28] sm:$0xff]  ;;  %v1426_v0 = vsel %vm1425_vm3, 1, %v4395_v53  ;;  %vm1787_vm4 = vcmp.lt.s32.totalorder %v1786_v63, %v3405_v5  ;;  %v1243_v63 = vstv %s1079_s19 }
  0x5f   : > { %2345 = vmatprep.subr.mxu1 %v4368_v62  ;;  %900 = vmatpush1.msra.mxu0 %v2871_v2  ;;  %vm1244_vm6 = vcmp.lt.s32.totalorder %v1243_v63, %v3405_v5 }
  0x60   : > { %2346 = vmatpush3.msra.mxu1 %v3471_v9  ;;  %901 = vmatprep.subr.mxu0 %v2876_v3 }
  0x61   : > { %2347 = vmatprep.subr.mxu1 %v4368_v62  ;;  %885 = vperm.xlu0 %2580, %v883_v54   ;;  %v1788_v54 = vsel %vm1787_vm4, 1, %v4395_v53 }
  0x62   : > { %2348 = vmatpush3.msra.mxu1 %v3481_v59  ;;  %902 = vmatpush1.msra.mxu0 %v2882_v4 }
  0x63   : > { %2349 = vmatprep.subr.mxu1 %v4368_v62  ;;  %903 = vmatprep.subr.mxu0 %v2889_v6 }
  0x64   : > { %2350 = vmatpush3.msra.mxu1 %v3491_v1  ;;  %904 = vmatpush1.msra.mxu0 %v2896_v7 }
  0x65   : > { %2351 = vmatprep.subr.mxu1 %v4368_v62  ;;  %1428 = vperm.xlu0 %2580, %v1426_v0   ;;  %v1062_v0 = vstv %s898_s20 }
  0x66   : > { %2352 = vmatpush3.msra.mxu1 %v3500_v57  ;;  %905 = vmatprep.subr.mxu0 %v2904_v8  ;;  %vm1063_vm5 = vcmp.lt.s32.totalorder %v1062_v0, %v3405_v5  ;;  %v533_v0 = vld [vmem:[%s2851_s28] sm:$0xff] }
  0x67   : > { %2354 = vmatmul.mubr.f32.vlgmr.msra.gmra.mxu1 %v3442_v51  ;;  %2356 = vmatprep.subr.mxu1 %v4368_v62  ;;  %v535_v63 = vunpack.c.l.bf16 %v533_v0 }
  0x68   : > { %2357 = vmatpush3.msra.mxu1 %v2947_v16  ;;  %906 = vmatpush1.msra.mxu0 %v2911_v10 }
  0x69   : > { %1790 = vperm.xlu0 %2580, %v1788_v54   ;;  %2358 = vmatprep.subr.mxu1 %v4368_v62  ;;  %v1064_v54 = vsel %vm1063_vm5, 1, %v4395_v53 }
  0x6a   : > { %2359 = vmatpush3.msra.mxu1 %v2959_v18  ;;  %907 = vmatprep.subr.mxu0 %v2918_v11 }
  0x6b   : > { %2360 = vmatprep.subr.mxu1 %v4368_v62  ;;  %908 = vmatpush1.msra.mxu0 %v2924_v12 }
  0x6c   : > { %2361 = vmatpush3.msra.mxu1 %v2971_v20  ;;  %909 = vmatprep.subr.mxu0 %v2930_v13 }
  0x6d   : > { %2362 = vmatprep.subr.mxu1 %v4368_v62  ;;  %910 = vmatpush1.msra.mxu0 %v2936_v14 }
  0x6e   : > { %2363 = vmatpush3.msra.mxu1 %v2990_v23  ;;  %911 = vmatprep.subr.mxu0 %v2942_v15 }
  0x6f   : > { %2364 = vmatprep.subr.mxu1 %v4368_v62  ;;  %912 = vmatpush1.msra.mxu0 %v2953_v17 }
  0x70   : > { %2365 = vmatpush3.msra.mxu1 %v3009_v26  ;;  %913 = vmatprep.subr.mxu0 %v2965_v19 }
  0x71   : > { %2366 = vmatprep.subr.mxu1 %v4368_v62  ;;  %914 = vmatpush1.msra.mxu0 %v2977_v21 }
  0x72   : > { %2367 = vmatpush3.msra.mxu1 %v3028_v29  ;;  %915 = vmatprep.subr.mxu0 %v2984_v22 }
  0x73   : > { %2368 = vmatprep.subr.mxu1 %v4368_v62  ;;  %916 = vmatpush1.msra.mxu0 %v2996_v24 }
  0x74   : > { %2369 = vmatpush3.msra.mxu1 %v3047_v32  ;;  %917 = vmatprep.subr.mxu0 %v3003_v25 }
  0x75   : > { %2370 = vmatprep.subr.mxu1 %v4368_v62  ;;  %918 = vmatpush1.msra.mxu0 %v3015_v27 }
  0x76   : > { %2371 = vmatpush3.msra.mxu1 %v3066_v35  ;;  %919 = vmatprep.subr.mxu0 %v3022_v28 }
  0x77   : > { %2372 = vmatprep.subr.mxu1 %v4368_v62  ;;  %920 = vmatpush1.msra.mxu0 %v3034_v30 }
  0x78   : > { %2373 = vmatpush3.msra.mxu1 %v3085_v38  ;;  %921 = vmatprep.subr.mxu0 %v3041_v31 }
  0x79   : > { %2374 = vmatprep.subr.mxu1 %v4368_v62  ;;  %922 = vmatpush1.msra.mxu0 %v3053_v33 }
  0x7a   : > { %2375 = vmatpush3.msra.mxu1 %v3104_v41  ;;  %923 = vmatprep.subr.mxu0 %v3060_v34 }
  0x7b   : > { %2376 = vmatprep.subr.mxu1 %v4368_v62  ;;  %924 = vmatpush1.msra.mxu0 %v3072_v36 }
  0x7c   : > { %2377 = vmatpush3.msra.mxu1 %v3123_v44  ;;  %925 = vmatprep.subr.mxu0 %v3079_v37 }
  0x7d   : > { %2378 = vmatprep.subr.mxu1 %v4368_v62  ;;  %926 = vmatpush1.msra.mxu0 %v3091_v39 }
  0x7e   : > { %2379 = vmatpush3.msra.mxu1 %v3151_v49  ;;  %927 = vmatprep.subr.mxu0 %v3098_v40 }
  0x7f   : > { %2380 = vmatprep.subr.mxu1 %v4368_v62  ;;  %928 = vmatpush1.msra.mxu0 %v3110_v42 }
  0x80   : > { %2381 = vmatpush3.msra.mxu1 %v3170_v52  ;;  %929 = vmatprep.subr.mxu0 %v3117_v43 }
  0x81   : > { %2382 = vmatprep.subr.mxu1 %v4368_v62  ;;  %930 = vmatpush1.msra.mxu0 %v3129_v45  ;;  %v1245_v45 = vsel %vm1244_vm6, 1, %v4395_v53 }
  0x82   : > { %2383 = vmatpush3.msra.mxu1 %v3189_v55  ;;  %963 = vmatprep.mubr.f32.mxu0 %v4368_v62  ;;  %v536_v55 = vunpack.c.h.bf16 %v533_v0 }
  0x83   : > { %2384 = vmatprep.subr.mxu1 %v4368_v62  ;;  %2388 = vmatprep.mubr.msk.f32.mxu1 %vm2770_vm0, %v4368_v62 }
  0x84   : > { %2385 = vmatpush3.msra.mxu1 %v3208_v58  ;;  %1080 = vmatprep.subr.mxu0 %v3138_v47  ;;  %v1605_v47 = vstv %s1441_s23 }
  0x85   : > { %2386 = vmatprep.subr.mxu1 %v4368_v62  ;;  %1066 = vperm.xlu1 %2581, %v1064_v54   ;;  %vm1606_vm7 = vcmp.lt.s32.totalorder %v1605_v47, %v3405_v5 }
  0x86   : > { %2387 = vmatpush3.msra.mxu1 %v3227_v61  ;;  %v1965_v61 = vstv %s2838_s17  ;;  %v1607_v43 = vsel %vm1606_vm7, 1, %v4395_v53 }
  0x87   : > { %2391 = vmatprep.subr.mxu1 %v4368_v62  ;;  %vm1966_vm8 = vcmp.lt.s32.totalorder %v1965_v61, %v3405_v5  ;;  %v2116_v61 = vld [vmem:[%s2856_s12 + $0x24] sm:$0xff] }
  0x88   : > { %v1967_v58 = vsel %vm1966_vm8, 1, %v4395_v53  ;;  %v3590_v53 = vld [vmem:[%s4221_s4] ss:$0 sm:$0xff] }
  0x89   : > { %1247 = vperm.xlu1 %2581, %v1245_v45   ;;  %4399 = vst [vmem:[#allocation64_spill] sm:$0xff] %v3590_v53 }
  0x8d   : > { %1609 = vperm.xlu1 %2581, %v1607_v43  }
  0x91   : > { %1969 = vperm.xlu1 %2581, %v1967_v58  }
  0xfc   : > { %v604_v42 = vpop.f32.mrf.mxu0 }
  0xfd   : > { %v679_v40 = vadd.f32 %v604_v42, %v535_v63  ;;  %v3593_v42 = vld [vmem:[%s2851_s28 + $0x8] ss:$12 sps:$4 sm:$0xff]  }
  0xfe   : > { %v606_v39 = vpop.f32.mrf.mxu0  ;;  %4400 = vst [vmem:[#allocation65_spill] sm:$0xff] %v3593_v42 }
  0xff   : > { %v2114_v54 = vmul.f32 -1.442695, %v679_v40  ;;  %v686_v47 = vadd.f32 %v606_v39, %v536_v55  ;;  %v714_v40 = vunpack.c.l.bf16 %v2116_v61 }
 0x101   : > { %2582 = vpow2.f32 %v2114_v54  ;;  %v2115_v45 = vmul.f32 -1.442695, %v686_v47 }
 0x102   : > { %v675_v37 = vpop.f32.mrf.mxu1 }
 0x103   : > { %2584 = vpow2.f32 %v2115_v45  ;;  %v693_v39 = vadd.f32 %v3590_v53, %v675_v37 }
 0x104   : > { %v2320_v52 = vpop.f32.mrf.mxu1 }
 0x105   : > { %v537_v52 = vunpack.c.l.bf16 %v3593_v42 }
 0x10e   : > { %v2583_v5 = vpop.eup %2582 }
 0x10f   : > { %v683_v43 = vadd.f32 1.0, %v2583_v5  ;;  %v715_v5 = vunpack.c.h.bf16 %v2116_v61  ;;  %v706_v61 = vpop.permute.xlu0 %705 }
 0x110   : > { %v2585_v58 = vpop.eup %2584  ;;  %vm707_vm9 = vcmp.eq.s32.totalorder %v706_v61, 1  ;;  %v4413_v61 = vld [vmem:[#allocation44_spill] sm:$0xff] }
 0x111   : > { %2586 = vrcp.f32 %v683_v43  ;;  %v690_v0 = vadd.f32 1.0, %v2585_v58 }
 0x113   : > { %2588 = vrcp.f32 %v690_v0 }
 0x11c   : > { %v784_v55 = vpop.f32.mrf.mxu0 }
 0x11d   : > { %v859_v63 = vadd.f32 %v784_v55, %v714_v40 }
 0x11e   : > { %v2587_v54 = vpop.eup %2586  ;;  %v786_v43 = vpop.f32.mrf.mxu0 }
 0x11f   : > { %v694_v47 = vmul.f32 %v2587_v54, %v693_v39  ;;  %v2118_v45 = vmul.f32 -1.442695, %v859_v63  ;;  %v866_v34 = vadd.f32 %v786_v43, %v715_v5  ;;  %v4408_v5 = vld [vmem:[#allocation23_spill] sm:$0xff] }
 0x120   : > { %v2589_v37 = vpop.eup %2588 }
 0x121   : > { %v695_v36 = vadd.f32 %v694_v47, %v537_v52  ;;  %2590 = vpow2.f32 %v2118_v45  ;;  %v2119_v49 = vmul.f32 -1.442695, %v866_v34  ;;  %v697_v42 = vsub.f32 1.0, %v2589_v37  ;;  %v4405_v52 = vld [vmem:[#allocation20_spill] sm:$0xff]  ;;  %v4406_v47 = vld [vmem:[#allocation21_spill] sm:$0xff]  ;;  %v4407_v45 = vld [vmem:[#allocation38_spill] sm:$0xff] }
 0x122   : > { %v699_v39 = vmul.f32 %v2589_v37, %v3133_v46  ;;  %v4410_v37 = vld [vmem:[#allocation41_spill] sm:$0xff] }
 0x123   : > { %2592 = vtanh.f32 %v695_v36 }
 0x124   : > { %2594 = vpow2.f32 %v2119_v49  ;;  %v4402_v49 = vld [vmem:[#allocation18_spill] sm:$0xff] }
 0x127   : > { %v855_v33 = vpop.f32.mrf.mxu1 }
 0x129   : > { %v2355_v58 = vpop.f32.mrf.mxu1 }
 0x12a   : > { %v4409_v58 = vld [vmem:[#allocation24_spill] sm:$0xff] }
 0x12e   : > { %v2591_v53 = vpop.eup %2590 }
 0x12f   : > { %v863_v31 = vadd.f32 1.0, %v2591_v53  ;;  %v4403_v53 = vld [vmem:[#allocation35_spill] sm:$0xff] }
 0x130   : > { %v2593_v40 = vpop.eup %2592 }
 0x131   : > { %2596 = vrcp.f32 %v863_v31  ;;  %v698_v0 = vmul.f32 %v2593_v40, %v697_v42  ;;  %v2595_v31 = vpop.eup %2594  ;;  %v3616_v42 = vld [vmem:[%s2856_s12 + $0x20] ss:$12 sps:$4 sm:$0xff]  }
 0x132   : > { %4404 = vst [vmem:[#allocation18_spill] sm:$0xff] %v3616_v42  ;;  %v870_v63 = vadd.f32 1.0, %v2595_v31  ;;  %v716_v43 = vunpack.c.h.bf16 %v3616_v42  ;;  %v4415_v31 = vld [vmem:[#allocation30_spill] sm:$0xff]  ;;  %v4417_v42 = vld [vmem:[#allocation31_spill] sm:$0xff] }
 0x133   : > { %v700_v55 = vadd.f32 %v699_v39, %v698_v0  ;;  %v4411_v0 = vld [vmem:[#allocation26_spill] sm:$0xff]  ;;  %v4412_v39 = vld [vmem:[#allocation27_spill] sm:$0xff] }
 0x134   : > { %2598 = vrcp.f32 %v870_v63  ;;  %v4418_v63 = vld [vmem:[#allocation32_spill] sm:$0xff] }
 0x135   : > { %v3599_v36 = vsel %vm707_vm9, %v700_v55, %v3133_v46  ;;  %v709_v34 = vsel %vm707_vm9, %v700_v55, 0.0  ;;  %v3611_v46 = vld [vmem:[%s4223_s6] ss:$0 sm:$0xff]  ;;  %v4414_v55 = vld [vmem:[#allocation29_spill] sm:$0xff] }
 0x136   : > { %710 = vst [vmem:[%s2846_s25] sm:$0xff] %v709_v34  ;;  %964 = vmatmul.mubr.f32.vlgmr.msra.gmra.mxu0 %v3599_v36  ;;  %2389 = vmatmul.mubr.f32.vlgmr.msra.gmra.mxu1 %v3599_v36  ;;  %4401 = vst [vmem:[#allocation66_spill] sm:$0xff] %v3611_v46  ;;  %v873_v54 = vadd.f32 %v3611_v46, %v855_v33  ;;  %v4416_v46 = vld [vmem:[#allocation47_spill] sm:$0xff] }
 0x137   : > { %1081 = vmatpush1.msra.mxu0 %v3145_v48  ;;  %2392 = vmatpush3.msra.mxu1 %v3260_v60 }
 0x138   : > { %1082 = vmatprep.subr.mxu0 %v3157_v50  ;;  %2393 = vmatprep.subr.mxu1 %v4368_v62 }
 0x139   : > { %1083 = vmatpush1.msra.mxu0 %v4402_v49  ;;  %2394 = vmatpush3.msra.mxu1 %v4403_v53 }
 0x13a   : > { %1084 = vmatprep.subr.mxu0 %v4405_v52  ;;  %2395 = vmatprep.subr.mxu1 %v4368_v62 }
 0x13b   : > { %1085 = vmatpush1.msra.mxu0 %v4406_v47  ;;  %2396 = vmatpush3.msra.mxu1 %v4407_v45 }
 0x13c   : > { %1086 = vmatprep.subr.mxu0 %v4408_v5  ;;  %2397 = vmatprep.subr.mxu1 %v4368_v62 }
 0x13d   : > { %1087 = vmatpush1.msra.mxu0 %v4409_v58  ;;  %2398 = vmatpush3.msra.mxu1 %v4410_v37 }
 0x13e   : > { %v2597_v40 = vpop.eup %2596  ;;  %1088 = vmatprep.subr.mxu0 %v4411_v0  ;;  %2399 = vmatprep.subr.mxu1 %v4368_v62 }
 0x13f   : > { %v874_v33 = vmul.f32 %v2597_v40, %v873_v54  ;;  %1089 = vmatpush1.msra.mxu0 %v4412_v39  ;;  %2400 = vmatpush3.msra.mxu1 %v4413_v61  ;;  %v4419_v54 = vld [vmem:[#allocation50_spill] sm:$0xff]  ;;  %v4420_v40 = vld [vmem:[#allocation33_spill] sm:$0xff] }
 0x140   : > { %1090 = vmatprep.subr.mxu0 %v4414_v55  ;;  %2401 = vmatprep.subr.mxu1 %v4368_v62  ;;  %v4421_v55 = vld [vmem:[#allocation34_spill] sm:$0xff] }
 0x141   : > { %v875_v34 = vadd.f32 %v874_v33, %v716_v43  ;;  %1091 = vmatpush1.msra.mxu0 %v4415_v31  ;;  %2402 = vmatpush3.msra.mxu1 %v4416_v46  ;;  %v4422_v43 = vld [vmem:[#allocation53_spill] sm:$0xff]  ;;  %v4423_v33 = vld [vmem:[#allocation36_spill] sm:$0xff] }
 0x142   : > { %1092 = vmatprep.subr.mxu0 %v4417_v42  ;;  %2403 = vmatprep.subr.mxu1 %v4368_v62  ;;  %v4424_v42 = vld [vmem:[#allocation37_spill] sm:$0xff]  ;;  %v4425_v46 = vld [vmem:[#allocation56_spill] sm:$0xff] }
 0x143   : > { %2600 = vtanh.f32 %v875_v34  ;;  %1093 = vmatpush1.msra.mxu0 %v4418_v63  ;;  %2404 = vmatpush3.msra.mxu1 %v4419_v54  ;;  %v4426_v34 = vld [vmem:[#allocation39_spill] sm:$0xff]  ;;  %v4427_v54 = vld [vmem:[#allocation40_spill] sm:$0xff]  ;;  %v4429_v63 = vld [vmem:[#allocation42_spill] sm:$0xff] }
 0x144   : > { %1094 = vmatprep.subr.mxu0 %v4420_v40  ;;  %2405 = vmatprep.subr.mxu1 %v4368_v62  ;;  %v4428_v40 = vld [vmem:[#allocation59_spill] sm:$0xff] }
 0x145   : > { %1095 = vmatpush1.msra.mxu0 %v4421_v55  ;;  %2406 = vmatpush3.msra.mxu1 %v4422_v43  ;;  %v4430_v43 = vld [vmem:[#allocation43_spill] sm:$0xff]  ;;  %v4440_v55 = vld [vmem:[#allocation57_spill] sm:$0xff] }
 0x146   : > { %1096 = vmatprep.subr.mxu0 %v4423_v33  ;;  %2407 = vmatprep.subr.mxu1 %v4368_v62  ;;  %v2599_v33 = vpop.eup %2598 }
 0x147   : > { %1097 = vmatpush1.msra.mxu0 %v4424_v42  ;;  %2408 = vmatpush3.msra.mxu1 %v4425_v46  ;;  %v4431_v42 = vld [vmem:[#allocation45_spill] sm:$0xff] }
 0x148   : > { %1098 = vmatprep.subr.mxu0 %v4426_v34  ;;  %2409 = vmatprep.subr.mxu1 %v4368_v62  ;;  %v4432_v34 = vld [vmem:[#allocation46_spill] sm:$0xff]  ;;  %v4433_v46 = vld [vmem:[#allocation61_spill] sm:$0xff] }
 0x149   : > { %1099 = vmatpush1.msra.mxu0 %v4427_v54  ;;  %2410 = vmatpush3.msra.mxu1 %v4428_v40  ;;  %v4434_v54 = vld [vmem:[#allocation48_spill] sm:$0xff] }
 0x14a   : > { %1100 = vmatprep.subr.mxu0 %v4429_v63  ;;  %2411 = vmatprep.subr.mxu1 %v4368_v62  ;;  %v4435_v63 = vld [vmem:[#allocation49_spill] sm:$0xff] }
 0x14b   : > { %1101 = vmatpush1.msra.mxu0 %v4430_v43  ;;  %2412 = vmatpush3.msra.mxu1 %v3450_v56  ;;  %v877_v43 = vsub.f32 1.0, %v2599_v33  ;;  %v4436_v56 = vld [vmem:[#allocation51_spill] sm:$0xff] }
 0x14c   : > { %1102 = vmatprep.subr.mxu0 %v4431_v42  ;;  %2413 = vmatprep.subr.mxu1 %v4368_v62  ;;  %v4437_v42 = vld [vmem:[#allocation52_spill] sm:$0xff] }
 0x14d   : > { %1103 = vmatpush1.msra.mxu0 %v4432_v34  ;;  %2414 = vmatpush3.msra.mxu1 %v4433_v46  ;;  %v879_v46 = vmul.f32 %v2599_v33, %v3442_v51  ;;  %v4460_v33 = vld [vmem:[#allocation64_spill] sm:$0xff] }
 0x14e   : > { %1104 = vmatprep.subr.mxu0 %v4434_v54  ;;  %2415 = vmatprep.subr.mxu1 %v4368_v62  ;;  %v4438_v54 = vld [vmem:[#allocation54_spill] sm:$0xff] }
 0x14f   : > { %1105 = vmatpush1.msra.mxu0 %v4435_v63  ;;  %2416 = vmatpush3.msra.mxu1 %v3471_v9  ;;  %v886_v63 = vpop.permute.xlu0 %885  ;;  %v4439_v9 = vld [vmem:[#allocation55_spill] sm:$0xff] }
 0x150   : > { %v2601_v40 = vpop.eup %2600  ;;  %1106 = vmatprep.subr.mxu0 %v4436_v56  ;;  %2417 = vmatprep.subr.mxu1 %v4368_v62  ;;  %vm887_vm10 = vcmp.eq.s32.totalorder %v886_v63, 1 }
 0x151   : > { %1107 = vmatpush1.msra.mxu0 %v4437_v42  ;;  %2418 = vmatpush3.msra.mxu1 %v3481_v59  ;;  %v878_v34 = vmul.f32 %v2601_v40, %v877_v43  ;;  %v4441_v59 = vld [vmem:[#allocation58_spill] sm:$0xff] }
 0x152   : > { %1108 = vmatprep.subr.mxu0 %v4438_v54  ;;  %2419 = vmatprep.subr.mxu1 %v4368_v62 }
 0x153   : > { %1109 = vmatpush1.msra.mxu0 %v4439_v9  ;;  %2420 = vmatpush3.msra.mxu1 %v3491_v1  ;;  %v880_v56 = vadd.f32 %v879_v46, %v878_v34  ;;  %v4442_v46 = vld [vmem:[#allocation5_spill] sm:$0xff] }
 0x154   : > { %1110 = vmatprep.subr.mxu0 %v4440_v55  ;;  %2421 = vmatprep.subr.mxu1 %v4368_v62 }
 0x155   : > { %1111 = vmatpush1.msra.mxu0 %v4441_v59  ;;  %1144 = vmatprep.mubr.f32.mxu0 %v4368_v62  ;;  %v3678_v40 = vsel %vm887_vm10, %v880_v56, %v3442_v51  ;;  %v889_v43 = vsel %vm887_vm10, %v880_v56, 0.0  ;;  %v4459_v56 = vld [vmem:[#allocation65_spill] sm:$0xff] }
 0x156   : > { %2422 = vmatpush3.msra.mxu1 %v3500_v57  ;;  %2423 = vmatprep.mubr.msk.f32.mxu1 %vm2770_vm0, %v4368_v62  ;;  %2120 = vst [vmem:[%s2861_s18 + $0x18] sm:$0xff] %v889_v43  ;;  %v897_v63 = vunpack.c.h.bf16 %v4459_v56  ;;  %v4481_v56 = vld [vmem:[#allocation46_spill] sm:$0xff] }
 0x157   : > { %1145 = vmatmul.mubr.f32.vlgmr.msra.gmra.mxu0 %v3678_v40  ;;  %2424 = vmatmul.mubr.f32.vlgmr.msra.gmra.mxu1 %v3678_v40 }
 0x158   : > { %1261 = vmatprep.subr.mxu0 %v4442_v46  ;;  %2426 = vmatprep.subr.mxu1 %v4368_v62 }
 0x159   : > { %1262 = vmatpush1.msra.mxu0 %v2871_v2  ;;  %2427 = vmatpush3.msra.mxu1 %v2947_v16  ;;  %v4443_v2 = vld [vmem:[#allocation6_spill] sm:$0xff] }
 0x15a   : > { %1263 = vmatprep.subr.mxu0 %v2876_v3  ;;  %2428 = vmatprep.subr.mxu1 %v4368_v62  ;;  %v4444_v3 = vld [vmem:[#allocation7_spill] sm:$0xff]  ;;  %v4455_v16 = vld [vmem:[#allocation14_spill] sm:$0xff] }
 0x15b   : > { %1264 = vmatpush1.msra.mxu0 %v2882_v4  ;;  %2429 = vmatpush3.msra.mxu1 %v2959_v18  ;;  %v4445_v4 = vld [vmem:[#allocation17_spill] sm:$0xff]  ;;  %v4457_v18 = vld [vmem:[#allocation28_spill] sm:$0xff] }
 0x15c   : > { %1265 = vmatprep.subr.mxu0 %v2889_v6  ;;  %2430 = vmatprep.subr.mxu1 %v4368_v62  ;;  %v4446_v6 = vld [vmem:[#allocation8_spill] sm:$0xff] }
 0x15d   : > { %1266 = vmatpush1.msra.mxu0 %v2896_v7  ;;  %2431 = vmatpush3.msra.mxu1 %v2971_v20  ;;  %v4447_v7 = vld [vmem:[#allocation9_spill] sm:$0xff] }
 0x15e   : > { %1267 = vmatprep.subr.mxu0 %v2904_v8  ;;  %2432 = vmatprep.subr.mxu1 %v4368_v62  ;;  %v4448_v8 = vld [vmem:[#allocation19_spill] sm:$0xff]  ;;  %v2121_v20 = vld [vmem:[%s2851_s28 + $0xc] sm:$0xff] }
 0x15f   : > { %1268 = vmatpush1.msra.mxu0 %v2911_v10  ;;  %2433 = vmatpush3.msra.mxu1 %v2990_v23  ;;  %v4449_v10 = vld [vmem:[#allocation10_spill] sm:$0xff] }
 0x160   : > { %1269 = vmatprep.subr.mxu0 %v2918_v11  ;;  %2434 = vmatprep.subr.mxu1 %v4368_v62  ;;  %v4450_v11 = vld [vmem:[#allocation11_spill] sm:$0xff] }
 0x161   : > { %1270 = vmatpush1.msra.mxu0 %v2924_v12  ;;  %2435 = vmatpush3.msra.mxu1 %v3009_v26  ;;  %v4451_v12 = vld [vmem:[#allocation22_spill] sm:$0xff] }
 0x162   : > { %1271 = vmatprep.subr.mxu0 %v2930_v13  ;;  %2436 = vmatprep.subr.mxu1 %v4368_v62  ;;  %v4452_v13 = vld [vmem:[#allocation12_spill] sm:$0xff] }
 0x163   : > { %1272 = vmatpush1.msra.mxu0 %v2936_v14  ;;  %2437 = vmatpush3.msra.mxu1 %v3028_v29  ;;  %v4453_v14 = vld [vmem:[#allocation13_spill] sm:$0xff] }
 0x164   : > { %1273 = vmatprep.subr.mxu0 %v2942_v15  ;;  %2438 = vmatprep.subr.mxu1 %v4368_v62  ;;  %v4454_v15 = vld [vmem:[#allocation25_spill] sm:$0xff] }
 0x165   : > { %1274 = vmatpush1.msra.mxu0 %v2953_v17  ;;  %2439 = vmatpush3.msra.mxu1 %v3047_v32  ;;  %v4456_v17 = vld [vmem:[#allocation15_spill] sm:$0xff] }
 0x166   : > { %1275 = vmatprep.subr.mxu0 %v2965_v19  ;;  %2440 = vmatprep.subr.mxu1 %v4368_v62  ;;  %v4458_v19 = vld [vmem:[#allocation16_spill] sm:$0xff] }
 0x167   : > { %1276 = vmatpush1.msra.mxu0 %v2977_v21  ;;  %2441 = vmatpush3.msra.mxu1 %v3066_v35  ;;  %v895_v21 = vunpack.c.l.bf16 %v2121_v20 }
 0x168   : > { %1277 = vmatprep.subr.mxu0 %v2984_v22  ;;  %2442 = vmatprep.subr.mxu1 %v4368_v62 }
 0x169   : > { %1278 = vmatpush1.msra.mxu0 %v2996_v24  ;;  %2443 = vmatpush3.msra.mxu1 %v3085_v38  ;;  %v2126_v38 = vld [vmem:[%s2856_s12 + $0x18] sm:$0xff] }
 0x16a   : > { %1279 = vmatprep.subr.mxu0 %v3003_v25  ;;  %2444 = vmatprep.subr.mxu1 %v4368_v62 }
 0x16b   : > { %1280 = vmatpush1.msra.mxu0 %v3015_v27  ;;  %2445 = vmatpush3.msra.mxu1 %v3104_v41  ;;  %v896_v27 = vunpack.c.h.bf16 %v2121_v20 }
 0x16c   : > { %1281 = vmatprep.subr.mxu0 %v3022_v28  ;;  %2446 = vmatprep.subr.mxu1 %v4368_v62 }
 0x16d   : > { %1282 = vmatpush1.msra.mxu0 %v3034_v30  ;;  %2447 = vmatpush3.msra.mxu1 %v3123_v44  ;;  %v1076_v44 = vunpack.c.l.bf16 %v2126_v38 }
 0x16e   : > { %1283 = vmatprep.subr.mxu0 %v4443_v2  ;;  %2448 = vmatprep.subr.mxu1 %v4368_v62 }
 0x16f   : > { %1284 = vmatpush1.msra.mxu0 %v4444_v3  ;;  %2449 = vmatpush3.msra.mxu1 %v4445_v4 }
 0x170   : > { %1285 = vmatprep.subr.mxu0 %v4446_v6  ;;  %2450 = vmatprep.subr.mxu1 %v4368_v62 }
 0x171   : > { %1286 = vmatpush1.msra.mxu0 %v4447_v7  ;;  %2451 = vmatpush3.msra.mxu1 %v4448_v8  ;;  %v1077_v8 = vunpack.c.h.bf16 %v2126_v38  ;;  %v4478_v38 = vld [vmem:[#allocation43_spill] sm:$0xff] }
 0x172   : > { %1287 = vmatprep.subr.mxu0 %v4449_v10  ;;  %2452 = vmatprep.subr.mxu1 %v4368_v62 }
 0x173   : > { %1288 = vmatpush1.msra.mxu0 %v4450_v11  ;;  %2453 = vmatpush3.msra.mxu1 %v4451_v12 }
 0x174   : > { %1289 = vmatprep.subr.mxu0 %v4452_v13  ;;  %2454 = vmatprep.subr.mxu1 %v4368_v62 }
 0x175   : > { %1290 = vmatpush1.msra.mxu0 %v4453_v14  ;;  %2455 = vmatpush3.msra.mxu1 %v4454_v15 }
 0x176   : > { %1291 = vmatprep.subr.mxu0 %v4455_v16  ;;  %2456 = vmatprep.subr.mxu1 %v4368_v62 }
 0x177   : > { %1292 = vmatpush1.msra.mxu0 %v4456_v17  ;;  %1325 = vmatprep.mubr.f32.mxu0 %v4368_v62 }
 0x178   : > { %2457 = vmatpush3.msra.mxu1 %v4457_v18  ;;  %2458 = vmatprep.mubr.msk.f32.mxu1 %vm2770_vm0, %v4368_v62 }
 0x179   : > { %1442 = vmatprep.subr.mxu0 %v4458_v19  ;;  %2461 = vmatprep.subr.mxu1 %v4368_v62  ;;  %v1067_v19 = vpop.permute.xlu1 %1066 }
 0x17a   : > { %vm1068_vm11 = vcmp.eq.s32.totalorder %v1067_v19, 1  ;;  %v2675_v19 = vld [vmem:[%s4220_s3 + $0x108] sm:$0xff] }
 0x1f6   : > { %v965_v22 = vpop.f32.mrf.mxu0  ;;  %v1036_v23 = vpop.f32.mrf.mxu1 }
 0x1f7   : > { %v1040_v24 = vadd.f32 %v965_v22, %v895_v21  ;;  %v1054_v34 = vadd.f32 %v4460_v33, %v1036_v23 }
 0x1f8   : > { %v2390_v25 = vpop.f32.mrf.mxu1  ;;  %v967_v28 = vpop.f32.mrf.mxu0 }
 0x1f9   : > { %v2123_v26 = vmul.f32 -1.442695, %v1040_v24  ;;  %v1047_v29 = vadd.f32 %v967_v28, %v896_v27  ;;  %v4472_v27 = vld [vmem:[#allocation37_spill] sm:$0xff]  ;;  %v4473_v28 = vld [vmem:[#allocation56_spill] sm:$0xff] }
 0x1fb   : > { %2602 = vpow2.f32 %v2123_v26  ;;  %v2124_v30 = vmul.f32 -1.442695, %v1047_v29  ;;  %v4470_v26 = vld [vmem:[#allocation53_spill] sm:$0xff]  ;;  %v4474_v29 = vld [vmem:[#allocation39_spill] sm:$0xff] }
 0x1fd   : > { %2604 = vpow2.f32 %v2124_v30  ;;  %v4475_v30 = vld [vmem:[#allocation40_spill] sm:$0xff] }
 0x208   : > { %v2603_v32 = vpop.eup %2602 }
 0x209   : > { %v1044_v35 = vadd.f32 1.0, %v2603_v32  ;;  %v4476_v32 = vld [vmem:[#allocation59_spill] sm:$0xff] }
 0x20a   : > { %v2605_v41 = vpop.eup %2604 }
 0x20b   : > { %2606 = vrcp.f32 %v1044_v35  ;;  %v1051_v51 = vadd.f32 1.0, %v2605_v41  ;;  %v4477_v35 = vld [vmem:[#allocation42_spill] sm:$0xff]  ;;  %v4479_v41 = vld [vmem:[#allocation60_spill] sm:$0xff] }
 0x20d   : > { %2608 = vrcp.f32 %v1051_v51 }
 0x217   : > { %v1146_v43 = vpop.f32.mrf.mxu0  ;;  %v1217_v46 = vpop.f32.mrf.mxu1 }
 0x218   : > { %v2607_v2 = vpop.eup %2606  ;;  %v1221_v3 = vadd.f32 %v1146_v43, %v1076_v44  ;;  %v4480_v44 = vld [vmem:[#allocation45_spill] sm:$0xff] }
 0x219   : > { %v1055_v4 = vmul.f32 %v2607_v2, %v1054_v34  ;;  %v2425_v6 = vpop.f32.mrf.mxu1  ;;  %v1148_v11 = vpop.f32.mrf.mxu0  ;;  %v4483_v34 = vld [vmem:[#allocation48_spill] sm:$0xff]  ;;  %v4484_v43 = vld [vmem:[#allocation49_spill] sm:$0xff] }
 0x21a   : > { %v2128_v7 = vmul.f32 -1.442695, %v1221_v3  ;;  %v1228_v12 = vadd.f32 %v1148_v11, %v1077_v8  ;;  %v2609_v14 = vpop.eup %2608  ;;  %v4486_v3 = vld [vmem:[#allocation51_spill] sm:$0xff] }
 0x21b   : > { %v1056_v10 = vadd.f32 %v1055_v4, %v897_v63  ;;  %v1058_v16 = vsub.f32 1.0, %v2609_v14  ;;  %v1060_v21 = vmul.f32 %v2609_v14, %v3599_v36  ;;  %v4482_v63 = vld [vmem:[#allocation61_spill] sm:$0xff]  ;;  %v4487_v6 = vld [vmem:[#allocation63_spill] sm:$0xff]  ;;  %v2670_v14 = vld [vmem:[%s4220_s3 + $0x148] sm:$0xff] }
 0x21c   : > { %2610 = vpow2.f32 %v2128_v7  ;;  %v2129_v13 = vmul.f32 -1.442695, %v1228_v12  ;;  %v2668_v12 = vld [vmem:[%s4220_s3 + $0x140] sm:$0xff] }
 0x21d   : > { %2612 = vtanh.f32 %v1056_v10  ;;  %v1248_v10 = vpop.permute.xlu1 %1247 }
 0x21e   : > { %2614 = vpow2.f32 %v2129_v13  ;;  %vm1249_vm12 = vcmp.eq.s32.totalorder %v1248_v10, 1  ;;  %v2669_v13 = vld [vmem:[%s4220_s3 + $0x138] sm:$0xff] }
 0x229   : > { %v2611_v15 = vpop.eup %2610 }
 0x22a   : > { %v2613_v17 = vpop.eup %2612  ;;  %v1225_v18 = vadd.f32 1.0, %v2611_v15  ;;  %v2671_v15 = vld [vmem:[%s4220_s3 + $0x128] sm:$0xff] }
 0x22b   : > { %v1059_v20 = vmul.f32 %v2613_v17, %v1058_v16  ;;  %v2615_v25 = vpop.eup %2614  ;;  %v2672_v16 = vld [vmem:[%s4220_s3 + $0x120] sm:$0xff]  ;;  %v2673_v17 = vld [vmem:[%s4220_s3 + $0x130] sm:$0xff] }
 0x22c   : > { %2616 = vrcp.f32 %v1225_v18  ;;  %v2674_v18 = vld [vmem:[%s4220_s3 + $0x110] sm:$0xff] }
 0x22d   : > { %v1061_v22 = vadd.f32 %v1060_v21, %v1059_v20  ;;  %v2676_v20 = vld [vmem:[%s4220_s3 + $0x118] sm:$0xff] }
 0x22e   : > { %v2677_v21 = vld [vmem:[%s4220_s3 + $0xf8] sm:$0xff] }
 0x22f   : > { %v3761_v23 = vsel %vm1068_vm11, %v1061_v22, %v3599_v36  ;;  %v1070_v24 = vsel %vm1068_vm11, %v1061_v22, 0.0  ;;  %v4462_v36 = vld [vmem:[#allocation66_spill] sm:$0xff]  ;;  %v2678_v22 = vld [vmem:[%s4220_s3 + $0xf0] sm:$0xff] }
 0x230   : > { %2125 = vst [vmem:[%s2846_s25 + $0x8] sm:$0xff] %v1070_v24  ;;  %1326 = vmatmul.mubr.f32.vlgmr.msra.gmra.mxu0 %v3761_v23  ;;  %2459 = vmatmul.mubr.f32.vlgmr.msra.gmra.mxu1 %v3761_v23  ;;  %v2679_v24 = vld [vmem:[%s4220_s3 + $0x100] sm:$0xff] }
 0x231   : > { %1443 = vmatpush1.msra.mxu0 %v3145_v48  ;;  %2462 = vmatpush3.msra.mxu1 %v3260_v60  ;;  %v1232_v48 = vadd.f32 1.0, %v2615_v25  ;;  %v2680_v25 = vld [vmem:[%s4220_s3 + $0xe0] sm:$0xff] }
 0x232   : > { %1444 = vmatprep.subr.mxu0 %v3157_v50  ;;  %2463 = vmatprep.subr.mxu1 %v4368_v62  ;;  %v4461_v50 = vld [vmem:[#allocation18_spill] sm:$0xff] }
 0x233   : > { %1445 = vmatpush1.msra.mxu0 %v4402_v49  ;;  %2464 = vmatpush3.msra.mxu1 %v4403_v53  ;;  %v1078_v60 = vunpack.c.l.bf16 %v4461_v50  ;;  %v1235_v49 = vadd.f32 %v4462_v36, %v1217_v46  ;;  %2618 = vrcp.f32 %v1232_v48  ;;  %v4485_v46 = vld [vmem:[#allocation62_spill] sm:$0xff]  ;;  %v2682_v50 = vld [vmem:[%s4220_s3 + $0xe8] sm:$0xff] }
 0x234   : > { %1446 = vmatprep.subr.mxu0 %v4405_v52  ;;  %2465 = vmatprep.subr.mxu1 %v4368_v62  ;;  %v2681_v48 = vld [vmem:[%s4220_s3 + $0xd8] sm:$0xff] }
 0x235   : > { %1447 = vmatpush1.msra.mxu0 %v4406_v47  ;;  %2466 = vmatpush3.msra.mxu1 %v4407_v45  ;;  %v4463_v47 = vld [vmem:[#allocation29_spill] sm:$0xff]  ;;  %v4464_v45 = vld [vmem:[#allocation47_spill] sm:$0xff] }
 0x236   : > { %1448 = vmatprep.subr.mxu0 %v4408_v5  ;;  %2467 = vmatprep.subr.mxu1 %v4368_v62 }
 0x237   : > { %1449 = vmatpush1.msra.mxu0 %v4409_v58  ;;  %2468 = vmatpush3.msra.mxu1 %v4410_v37  ;;  %v4465_v58 = vld [vmem:[#allocation31_spill] sm:$0xff]  ;;  %v4466_v37 = vld [vmem:[#allocation32_spill] sm:$0xff] }
 0x238   : > { %1450 = vmatprep.subr.mxu0 %v4411_v0  ;;  %2469 = vmatprep.subr.mxu1 %v4368_v62  ;;  %v4467_v0 = vld [vmem:[#allocation50_spill] sm:$0xff] }
 0x239   : > { %v2617_v53 = vpop.eup %2616  ;;  %1451 = vmatpush1.msra.mxu0 %v4412_v39  ;;  %2470 = vmatpush3.msra.mxu1 %v4413_v61  ;;  %v4468_v39 = vld [vmem:[#allocation33_spill] sm:$0xff]  ;;  %v4469_v61 = vld [vmem:[#allocation34_spill] sm:$0xff] }
 0x23a   : > { %v1236_v52 = vmul.f32 %v2617_v53, %v1235_v49  ;;  %1452 = vmatprep.subr.mxu0 %v4463_v47  ;;  %2471 = vmatprep.subr.mxu1 %v4368_v62  ;;  %v2684_v49 = vld [vmem:[%s4220_s3 + $0xc0] sm:$0xff]  ;;  %v2685_v53 = vld [vmem:[%s4220_s3 + $0xd0] sm:$0xff]  ;;  %v2687_v47 = vld [vmem:[%s4220_s3 + $0xa8] sm:$0xff] }
 0x23b   : > { %1453 = vmatpush1.msra.mxu0 %v4415_v31  ;;  %2472 = vmatpush3.msra.mxu1 %v4464_v45  ;;  %v4471_v31 = vld [vmem:[#allocation36_spill] sm:$0xff]  ;;  %v2688_v45 = vld [vmem:[%s4220_s3 + $0xb8] sm:$0xff] }
 0x23c   : > { %v1237_v5 = vadd.f32 %v1236_v52, %v1078_v60  ;;  %1454 = vmatprep.subr.mxu0 %v4465_v58  ;;  %2473 = vmatprep.subr.mxu1 %v4368_v62  ;;  %v2683_v60 = vld [vmem:[%s4220_s3 + $0xc8] sm:$0xff]  ;;  %v2686_v52 = vld [vmem:[%s4220_s3 + $0xb0] sm:$0xff] }
 0x23d   : > { %1455 = vmatpush1.msra.mxu0 %v4466_v37  ;;  %2474 = vmatpush3.msra.mxu1 %v4467_v0  ;;  %v2690_v58 = vld [vmem:[%s4220_s3 + $0x90] sm:$0xff]  ;;  %v2691_v37 = vld [vmem:[%s4220_s3 + $0xa0] sm:$0xff] }
 0x23e   : > { %2620 = vtanh.f32 %v1237_v5  ;;  %1456 = vmatprep.subr.mxu0 %v4468_v39  ;;  %2475 = vmatprep.subr.mxu1 %v4368_v62  ;;  %v2689_v5 = vld [vmem:[%s4220_s3 + $0x98] sm:$0xff]  ;;  %v2692_v0 = vld [vmem:[%s4220_s3 + $0x80] sm:$0xff] }
 0x23f   : > { %1457 = vmatpush1.msra.mxu0 %v4469_v61  ;;  %2476 = vmatpush3.msra.mxu1 %v4470_v26  ;;  %v2693_v39 = vld [vmem:[%s4220_s3 + $0x78] sm:$0xff]  ;;  %v2694_v61 = vld [vmem:[%s4220_s3 + $0x88] sm:$0xff] }
 0x240   : > { %1458 = vmatprep.subr.mxu0 %v4471_v31  ;;  %2477 = vmatprep.subr.mxu1 %v4368_v62  ;;  %v2619_v51 = vpop.eup %2618  ;;  %v2695_v26 = vld [vmem:[%s4220_s3 + $0x68] sm:$0xff]  ;;  %v2696_v31 = vld [vmem:[%s4220_s3 + $0x60] sm:$0xff] }
 0x241   : > { %1459 = vmatpush1.msra.mxu0 %v4472_v27  ;;  %2478 = vmatpush3.msra.mxu1 %v4473_v28  ;;  %v1239_v2 = vsub.f32 1.0, %v2619_v51  ;;  %v1241_v8 = vmul.f32 %v2619_v51, %v3678_v40  ;;  %v2697_v27 = vld [vmem:[%s4220_s3 + $0x70] sm:$0xff]  ;;  %v2706_v51 = vld [vmem:[%s4220_s3 + $0x28] sm:$0xff] }
 0x242   : > { %1460 = vmatprep.subr.mxu0 %v4474_v29  ;;  %2479 = vmatprep.subr.mxu1 %v4368_v62  ;;  %v2698_v28 = vld [vmem:[%s4220_s3 + $0x50] sm:$0xff]  ;;  %v2699_v29 = vld [vmem:[%s4220_s3 + $0x48] sm:$0xff] }
 0x243   : > { %1461 = vmatpush1.msra.mxu0 %v4475_v30  ;;  %2480 = vmatpush3.msra.mxu1 %v4476_v32  ;;  %v2700_v30 = vld [vmem:[%s4220_s3 + $0x58] sm:$0xff] }
 0x244   : > { %1462 = vmatprep.subr.mxu0 %v4477_v35  ;;  %2481 = vmatprep.subr.mxu1 %v4368_v62  ;;  %v2701_v32 = vld [vmem:[%s4220_s3 + $0x38] sm:$0xff]  ;;  %v2702_v35 = vld [vmem:[%s4220_s3 + $0x30] sm:$0xff] }
 0x245   : > { %1463 = vmatpush1.msra.mxu0 %v4478_v38  ;;  %2482 = vmatpush3.msra.mxu1 %v4479_v41  ;;  %v2703_v38 = vld [vmem:[%s4220_s3 + $0x40] sm:$0xff] }
 0x246   : > { %1464 = vmatprep.subr.mxu0 %v4480_v44  ;;  %2483 = vmatprep.subr.mxu1 %v4368_v62  ;;  %v2704_v41 = vld [vmem:[%s4220_s3 + $0x20] sm:$0xff]  ;;  %v2705_v44 = vld [vmem:[%s4220_s3 + $0x18] sm:$0xff] }
 0x247   : > { %1465 = vmatpush1.msra.mxu0 %v4481_v56  ;;  %2484 = vmatpush3.msra.mxu1 %v4482_v63  ;;  %v2707_v56 = vld [vmem:[%s4220_s3 + $0x8] sm:$0xff]  ;;  %v2708_v63 = vld [vmem:[%s4220_s3] sm:$0xff] }
 0x248   : > { %1466 = vmatprep.subr.mxu0 %v4483_v34  ;;  %2485 = vmatprep.subr.mxu1 %v4368_v62  ;;  %v2709_v34 = vld [vmem:[%s4220_s3 + $0x10] sm:$0xff] }
 0x249   : > { %1467 = vmatpush1.msra.mxu0 %v4484_v43  ;;  %2486 = vmatpush3.msra.mxu1 %v4485_v46  ;;  %v2710_v43 = vld [vmem:[%s4222_s5 + $0x170] sm:$0xff]  ;;  %v2131_v46 = vld [vmem:[%s2851_s28 + $0x18] sm:$0xff] }
 0x24a   : > { %1468 = vmatprep.subr.mxu0 %v4486_v3  ;;  %2487 = vmatprep.subr.mxu1 %v4368_v62  ;;  %v1258_v10 = vunpack.c.h.bf16 %v2131_v46 }
 0x24b   : > { %v2621_v4 = vpop.eup %2620  ;;  %1469 = vmatpush1.msra.mxu0 %v4437_v42  ;;  %2488 = vmatpush3.msra.mxu1 %v4487_v6 }
 0x24c   : > { %v1240_v7 = vmul.f32 %v2621_v4, %v1239_v2  ;;  %1470 = vmatprep.subr.mxu0 %v4438_v54  ;;  %2489 = vmatprep.subr.mxu1 %v4368_v62  ;;  %v1257_v2 = vunpack.c.l.bf16 %v2131_v46  ;;  %v2723_v46 = vld [vmem:[%s4222_s5 + $0x108] sm:$0xff] }
 0x24d   : > { %1471 = vmatpush1.msra.mxu0 %v4439_v9  ;;  %2490 = vmatpush3.msra.mxu1 %v3491_v1  ;;  %v2662_v1 = vld [vmem:[%s4220_s3 + $0x170] sm:$0xff]  ;;  %v2663_v9 = vld [vmem:[%s4220_s3 + $0x168] sm:$0xff] }
 0x24e   : > { %v1242_v11 = vadd.f32 %v1241_v8, %v1240_v7  ;;  %1472 = vmatprep.subr.mxu0 %v4440_v55  ;;  %2491 = vmatprep.subr.mxu1 %v4368_v62  ;;  %v2666_v55 = vld [vmem:[%s4220_s3 + $0x150] sm:$0xff] }
 0x24f   : > { %1473 = vmatpush1.msra.mxu0 %v4441_v59  ;;  %1506 = vmatprep.mubr.f32.mxu0 %v4368_v62  ;;  %v2664_v59 = vld [vmem:[%s4220_s3 + $0x178] sm:$0xff] }
 0x250   : > { %v3832_v42 = vsel %vm1249_vm12, %v1242_v11, %v3678_v40  ;;  %v1251_v54 = vsel %vm1249_vm12, %v1242_v11, 0.0  ;;  %2492 = vmatpush3.msra.mxu1 %v3500_v57  ;;  %2493 = vmatprep.mubr.msk.f32.mxu1 %vm2770_vm0, %v4368_v62  ;;  %v2665_v57 = vld [vmem:[%s4220_s3 + $0x158] sm:$0xff]  ;;  %v2667_v40 = vld [vmem:[%s4220_s3 + $0x160] sm:$0xff] }
 0x251   : > { %2130 = vst [vmem:[%s2861_s18 + $0x10] sm:$0xff] %v1251_v54  ;;  %1507 = vmatmul.mubr.f32.vlgmr.msra.gmra.mxu0 %v3832_v42  ;;  %2494 = vmatmul.mubr.f32.vlgmr.msra.gmra.mxu1 %v3832_v42 }
 0x252   : > { %1623 = vmatprep.subr.mxu0 %v2662_v1  ;;  %2496 = vmatprep.subr.mxu1 %v4368_v62 }
 0x253   : > { %1624 = vmatpush1.msra.mxu0 %v2663_v9  ;;  %2497 = vmatpush3.msra.mxu1 %v2664_v59 }
 0x254   : > { %1625 = vmatprep.subr.mxu0 %v2665_v57  ;;  %2498 = vmatprep.subr.mxu1 %v4368_v62  ;;  %v2136_v57 = vld [vmem:[%s2856_s12 + $0xc] sm:$0xff] }
 0x255   : > { %1626 = vmatpush1.msra.mxu0 %v2666_v55  ;;  %2499 = vmatpush3.msra.mxu1 %v2667_v40  ;;  %v4010_v40 = vld [vmem:[%s2851_s28 + $0x20] ss:$12 sps:$4 sm:$0xff]  }
 0x256   : > { %1627 = vmatprep.subr.mxu0 %v2668_v12  ;;  %2500 = vmatprep.subr.mxu1 %v4368_v62  ;;  %v1438_v12 = vunpack.c.l.bf16 %v2136_v57 }
 0x257   : > { %1628 = vmatpush1.msra.mxu0 %v2669_v13  ;;  %2501 = vmatpush3.msra.mxu1 %v2670_v14  ;;  %v1259_v14 = vunpack.c.l.bf16 %v4010_v40 }
 0x258   : > { %1629 = vmatprep.subr.mxu0 %v2671_v15  ;;  %2502 = vmatprep.subr.mxu1 %v4368_v62 }
 0x259   : > { %1630 = vmatpush1.msra.mxu0 %v2672_v16  ;;  %2503 = vmatpush3.msra.mxu1 %v2673_v17 }
 0x25a   : > { %1631 = vmatprep.subr.mxu0 %v2674_v18  ;;  %2504 = vmatprep.subr.mxu1 %v4368_v62 }
 0x25b   : > { %1632 = vmatpush1.msra.mxu0 %v2675_v19  ;;  %2505 = vmatpush3.msra.mxu1 %v2676_v20 }
 0x25c   : > { %1633 = vmatprep.subr.mxu0 %v2677_v21  ;;  %2506 = vmatprep.subr.mxu1 %v4368_v62 }
 0x25d   : > { %1634 = vmatpush1.msra.mxu0 %v2678_v22  ;;  %2507 = vmatpush3.msra.mxu1 %v2679_v24  ;;  %v1439_v24 = vunpack.c.h.bf16 %v2136_v57  ;;  %v2735_v57 = vld [vmem:[%s4222_s5 + $0xa8] sm:$0xff] }
 0x25e   : > { %1635 = vmatprep.subr.mxu0 %v2680_v25  ;;  %2508 = vmatprep.subr.mxu1 %v4368_v62 }
 0x25f   : > { %1636 = vmatpush1.msra.mxu0 %v2681_v48  ;;  %2509 = vmatpush3.msra.mxu1 %v2682_v50 }
 0x260   : > { %1637 = vmatprep.subr.mxu0 %v2683_v60  ;;  %2510 = vmatprep.subr.mxu1 %v4368_v62 }
 0x261   : > { %1638 = vmatpush1.msra.mxu0 %v2684_v49  ;;  %2511 = vmatpush3.msra.mxu1 %v2685_v53 }
 0x262   : > { %1639 = vmatprep.subr.mxu0 %v2686_v52  ;;  %2512 = vmatprep.subr.mxu1 %v4368_v62 }
 0x263   : > { %1640 = vmatpush1.msra.mxu0 %v2687_v47  ;;  %2513 = vmatpush3.msra.mxu1 %v2688_v45 }
 0x264   : > { %1641 = vmatprep.subr.mxu0 %v2689_v5  ;;  %2514 = vmatprep.subr.mxu1 %v4368_v62 }
 0x265   : > { %1642 = vmatpush1.msra.mxu0 %v2690_v58  ;;  %2515 = vmatpush3.msra.mxu1 %v2691_v37  ;;  %v1429_v58 = vpop.permute.xlu0 %1428 }
 0x266   : > { %1643 = vmatprep.subr.mxu0 %v2692_v0  ;;  %2516 = vmatprep.subr.mxu1 %v4368_v62  ;;  %vm1430_vm13 = vcmp.eq.s32.totalorder %v1429_v58, 1  ;;  %v1610_v58 = vpop.permute.xlu1 %1609 }
 0x267   : > { %1644 = vmatpush1.msra.mxu0 %v2693_v39  ;;  %2517 = vmatpush3.msra.mxu1 %v2694_v61  ;;  %v2711_v61 = vld [vmem:[%s4222_s5 + $0x168] sm:$0xff]  ;;  %vm1611_vm14 = vcmp.eq.s32.totalorder %v1610_v58, 1 }
 0x268   : > { %1645 = vmatprep.subr.mxu0 %v2695_v26  ;;  %2518 = vmatprep.subr.mxu1 %v4368_v62  ;;  %v2712_v26 = vld [vmem:[%s4222_s5 + $0x178] sm:$0xff] }
 0x269   : > { %1646 = vmatpush1.msra.mxu0 %v2696_v31  ;;  %2519 = vmatpush3.msra.mxu1 %v2697_v27  ;;  %v2714_v27 = vld [vmem:[%s4222_s5 + $0x150] sm:$0xff] }
 0x26a   : > { %1647 = vmatprep.subr.mxu0 %v2698_v28  ;;  %2520 = vmatprep.subr.mxu1 %v4368_v62  ;;  %v2715_v28 = vld [vmem:[%s4222_s5 + $0x160] sm:$0xff] }
 0x26b   : > { %1648 = vmatpush1.msra.mxu0 %v2699_v29  ;;  %2521 = vmatpush3.msra.mxu1 %v2700_v30  ;;  %v2716_v29 = vld [vmem:[%s4222_s5 + $0x140] sm:$0xff]  ;;  %v4042_v30 = vld [vmem:[%s2856_s12 + $0x8] ss:$12 sps:$4 sm:$0xff]  }
 0x26c   : > { %1649 = vmatprep.subr.mxu0 %v2701_v32  ;;  %2522 = vmatprep.subr.mxu1 %v4368_v62  ;;  %v2717_v32 = vld [vmem:[%s4222_s5 + $0x138] sm:$0xff] }
 0x26d   : > { %1650 = vmatpush1.msra.mxu0 %v2702_v35  ;;  %2523 = vmatpush3.msra.mxu1 %v2703_v38  ;;  %v2718_v35 = vld [vmem:[%s4222_s5 + $0x148] sm:$0xff] }
 0x26e   : > { %1651 = vmatprep.subr.mxu0 %v2704_v41  ;;  %2524 = vmatprep.subr.mxu1 %v4368_v62  ;;  %v2719_v41 = vld [vmem:[%s4222_s5 + $0x128] sm:$0xff] }
 0x26f   : > { %1652 = vmatpush1.msra.mxu0 %v2705_v44  ;;  %2525 = vmatpush3.msra.mxu1 %v2706_v51  ;;  %v2720_v44 = vld [vmem:[%s4222_s5 + $0x120] sm:$0xff]  ;;  %v2721_v51 = vld [vmem:[%s4222_s5 + $0x130] sm:$0xff] }
 0x270   : > { %1653 = vmatprep.subr.mxu0 %v2707_v56  ;;  %2526 = vmatprep.subr.mxu1 %v4368_v62  ;;  %v1440_v56 = vunpack.c.h.bf16 %v4042_v30 }
 0x271   : > { %1654 = vmatpush1.msra.mxu0 %v2708_v63  ;;  %1687 = vmatprep.mubr.f32.mxu0 %v4368_v62 }
 0x272   : > { %2527 = vmatpush3.msra.mxu1 %v2709_v34  ;;  %2528 = vmatprep.mubr.msk.f32.mxu1 %vm2770_vm0, %v4368_v62  ;;  %v2722_v34 = vld [vmem:[%s4222_s5 + $0x110] sm:$0xff] }
 0x273   : > { %1802 = vmatprep.subr.mxu0 %v2710_v43  ;;  %2531 = vmatprep.subr.mxu1 %v4368_v62 }
 0x2f0   : > { %v1327_v3 = vpop.f32.mrf.mxu0  ;;  %v1398_v4 = vpop.f32.mrf.mxu1 }
 0x2f1   : > { %v1402_v6 = vadd.f32 %v1327_v3, %v1257_v2  ;;  %v1416_v15 = vadd.f32 %v4460_v33, %v1398_v4  ;;  %v2724_v2 = vld [vmem:[%s4222_s5 + $0x118] sm:$0xff]  ;;  %v2726_v4 = vld [vmem:[%s4222_s5 + $0xf0] sm:$0xff] }
 0x2f2   : > { %v2460_v7 = vpop.f32.mrf.mxu1  ;;  %v1329_v11 = vpop.f32.mrf.mxu0 }
 0x2f3   : > { %v2133_v8 = vmul.f32 -1.442695, %v1402_v6  ;;  %v1409_v54 = vadd.f32 %v1329_v11, %v1258_v10  ;;  %v2727_v6 = vld [vmem:[%s4222_s5 + $0x100] sm:$0xff]  ;;  %v2729_v10 = vld [vmem:[%s4222_s5 + $0xd8] sm:$0xff]  ;;  %v2730_v11 = vld [vmem:[%s4222_s5 + $0xe8] sm:$0xff] }
 0x2f5   : > { %2622 = vpow2.f32 %v2133_v8  ;;  %v2134_v1 = vmul.f32 -1.442695, %v1409_v54  ;;  %v2728_v8 = vld [vmem:[%s4222_s5 + $0xe0] sm:$0xff]  ;;  %v2731_v54 = vld [vmem:[%s4222_s5 + $0xc8] sm:$0xff] }
 0x2f7   : > { %2624 = vpow2.f32 %v2134_v1  ;;  %v2732_v1 = vld [vmem:[%s4222_s5 + $0xc0] sm:$0xff] }
 0x302   : > { %v2623_v9 = vpop.eup %2622 }
 0x303   : > { %v1406_v59 = vadd.f32 1.0, %v2623_v9  ;;  %v2733_v9 = vld [vmem:[%s4222_s5 + $0xd0] sm:$0xff] }
 0x304   : > { %v2625_v55 = vpop.eup %2624 }
 0x305   : > { %2626 = vrcp.f32 %v1406_v59  ;;  %v1413_v13 = vadd.f32 1.0, %v2625_v55  ;;  %v2734_v59 = vld [vmem:[%s4222_s5 + $0xb0] sm:$0xff]  ;;  %v2736_v55 = vld [vmem:[%s4222_s5 + $0xb8] sm:$0xff] }
 0x307   : > { %2628 = vrcp.f32 %v1413_v13  ;;  %v2738_v13 = vld [vmem:[%s4222_s5 + $0x90] sm:$0xff] }
 0x311   : > { %v1508_v16 = vpop.f32.mrf.mxu0  ;;  %v1579_v17 = vpop.f32.mrf.mxu1 }
 0x312   : > { %v2627_v18 = vpop.eup %2626  ;;  %v1583_v19 = vadd.f32 %v1508_v16, %v1438_v12  ;;  %v1597_v63 = vadd.f32 %v4462_v36, %v1579_v17  ;;  %v2725_v36 = vld [vmem:[%s4222_s5 + $0xf8] sm:$0xff]  ;;  %v2742_v17 = vld [vmem:[%s4222_s5 + $0x88] sm:$0xff] }
 0x313   : > { %v1417_v20 = vmul.f32 %v2627_v18, %v1416_v15  ;;  %v2495_v21 = vpop.f32.mrf.mxu1  ;;  %v1510_v48 = vpop.f32.mrf.mxu0  ;;  %v2737_v12 = vld [vmem:[%s4222_s5 + $0x98] sm:$0xff]  ;;  %v2740_v15 = vld [vmem:[%s4222_s5 + $0x80] sm:$0xff]  ;;  %v2743_v18 = vld [vmem:[%s4222_s5 + $0x68] sm:$0xff] }
 0x314   : > { %v2138_v22 = vmul.f32 -1.442695, %v1583_v19  ;;  %v1590_v50 = vadd.f32 %v1510_v48, %v1439_v24  ;;  %v2629_v49 = vpop.eup %2628  ;;  %v2741_v16 = vld [vmem:[%s4222_s5 + $0x78] sm:$0xff]  ;;  %v2745_v21 = vld [vmem:[%s4222_s5 + $0x70] sm:$0xff]  ;;  %v2747_v24 = vld [vmem:[%s4222_s5 + $0x48] sm:$0xff] }
 0x315   : > { %v1418_v25 = vadd.f32 %v1417_v20, %v1259_v14  ;;  %v1420_v33 = vsub.f32 1.0, %v2629_v49  ;;  %v1422_v5 = vmul.f32 %v2629_v49, %v3761_v23  ;;  %v2739_v14 = vld [vmem:[%s4222_s5 + $0xa0] sm:$0xff]  ;;  %v2749_v48 = vld [vmem:[%s4222_s5 + $0x38] sm:$0xff]  ;;  %v2750_v49 = vld [vmem:[%s4222_s5 + $0x30] sm:$0xff] }
 0x316   : > { %2630 = vpow2.f32 %v2138_v22  ;;  %v2139_v60 = vmul.f32 -1.442695, %v1590_v50  ;;  %v2744_v20 = vld [vmem:[%s4222_s5 + $0x60] sm:$0xff]  ;;  %v2746_v22 = vld [vmem:[%s4222_s5 + $0x50] sm:$0xff] }
 0x317   : > { %2632 = vtanh.f32 %v1418_v25  ;;  %v2748_v25 = vld [vmem:[%s4222_s5 + $0x58] sm:$0xff] }
 0x318   : > { %2634 = vpow2.f32 %v2139_v60 }
 0x323   : > { %v2631_v53 = vpop.eup %2630 }
 0x324   : > { %v2633_v52 = vpop.eup %2632  ;;  %v1587_v47 = vadd.f32 1.0, %v2631_v53  ;;  %v2751_v53 = vld [vmem:[%s4222_s5 + $0x40] sm:$0xff] }
 0x325   : > { %v1421_v45 = vmul.f32 %v2633_v52, %v1420_v33  ;;  %v2635_v31 = vpop.eup %2634  ;;  %v2752_v33 = vld [vmem:[%s4222_s5 + $0x20] sm:$0xff] }
 0x326   : > { %2636 = vrcp.f32 %v1587_v47  ;;  %v1594_v38 = vadd.f32 1.0, %v2635_v31 }
 0x327   : > { %v1423_v37 = vadd.f32 %v1422_v5, %v1421_v45  ;;  %v2753_v45 = vld [vmem:[%s4222_s5 + $0x18] sm:$0xff]  ;;  %v2754_v5 = vld [vmem:[%s4222_s5 + $0x28] sm:$0xff] }
 0x328   : > { %2638 = vrcp.f32 %v1594_v38 }
 0x329   : > { %v4016_v0 = vsel %vm1430_vm13, %v1423_v37, %v3761_v23  ;;  %v1432_v39 = vsel %vm1430_vm13, %v1423_v37, 0.0  ;;  %v2713_v23 = vld [vmem:[%s4222_s5 + $0x158] sm:$0xff]  ;;  %v2755_v37 = vld [vmem:[%s4222_s5 + $0x8] sm:$0xff] }
 0x32a   : > { %2135 = vst [vmem:[%s2846_s25 + $0x10] sm:$0xff] %v1432_v39  ;;  %1688 = vmatmul.mubr.f32.vlgmr.msra.gmra.mxu0 %v4016_v0  ;;  %2529 = vmatmul.mubr.f32.vlgmr.msra.gmra.mxu1 %v4016_v0 }
 0x32b   : > { %1803 = vmatpush1.msra.mxu0 %v2711_v61  ;;  %2532 = vmatpush3.msra.mxu1 %v2712_v26  ;;  %v2756_v61 = vld [vmem:[%s4222_s5] sm:$0xff]  ;;  %v2757_v26 = vld [vmem:[%s4222_s5 + $0x10] sm:$0xff] }
 0x32c   : > { %1804 = vmatprep.subr.mxu0 %v2713_v23  ;;  %2533 = vmatprep.subr.mxu1 %v4368_v62 }
 0x32d   : > { %1805 = vmatpush1.msra.mxu0 %v2714_v27  ;;  %2534 = vmatpush3.msra.mxu1 %v2715_v28  ;;  %v2141_v27 = vld [vmem:[%s2851_s28 + $0x24] sm:$0xff] }
 0x32e   : > { %1806 = vmatprep.subr.mxu0 %v2716_v29  ;;  %2535 = vmatprep.subr.mxu1 %v4368_v62  ;;  %v1619_v28 = vunpack.c.l.bf16 %v2141_v27 }
 0x32f   : > { %1807 = vmatpush1.msra.mxu0 %v2717_v32  ;;  %2536 = vmatpush3.msra.mxu1 %v2718_v35 }
 0x330   : > { %1808 = vmatprep.subr.mxu0 %v2719_v41  ;;  %2537 = vmatprep.subr.mxu1 %v4368_v62 }
 0x331   : > { %1809 = vmatpush1.msra.mxu0 %v2720_v44  ;;  %2538 = vmatpush3.msra.mxu1 %v2721_v51  ;;  %v1620_v44 = vunpack.c.h.bf16 %v2141_v27 }
 0x332   : > { %1810 = vmatprep.subr.mxu0 %v2722_v34  ;;  %2539 = vmatprep.subr.mxu1 %v4368_v62  ;;  %v1797_v34 = vld [vmem:[%s2856_s12] sm:$0xff] }
 0x333   : > { %v2637_v43 = vpop.eup %2636  ;;  %1811 = vmatpush1.msra.mxu0 %v2723_v46  ;;  %2540 = vmatpush3.msra.mxu1 %v2724_v2  ;;  %v1799_v46 = vunpack.c.l.bf16 %v1797_v34 }
 0x334   : > { %v1598_v3 = vmul.f32 %v2637_v43, %v1597_v63  ;;  %1812 = vmatprep.subr.mxu0 %v2725_v36  ;;  %2541 = vmatprep.subr.mxu1 %v4368_v62  ;;  %v2758_v36 = vld [vmem:[%s4221_s4] ss:$0 sm:$0xff] }
 0x335   : > { %1813 = vmatpush1.msra.mxu0 %v2726_v4  ;;  %2542 = vmatpush3.msra.mxu1 %v2727_v6  ;;  %v2639_v19 = vpop.eup %2638 }
 0x336   : > { %v1599_v7 = vadd.f32 %v1598_v3, %v1440_v56  ;;  %1814 = vmatprep.subr.mxu0 %v2728_v8  ;;  %2543 = vmatprep.subr.mxu1 %v4368_v62  ;;  %v1601_v50 = vsub.f32 1.0, %v2639_v19  ;;  %v1603_v47 = vmul.f32 %v2639_v19, %v3832_v42  ;;  %v1621_v3 = vunpack.c.h.bf16 %v4010_v40 }
 0x337   : > { %1815 = vmatpush1.msra.mxu0 %v2729_v10  ;;  %2544 = vmatpush3.msra.mxu1 %v2730_v11 }
 0x338   : > { %2640 = vtanh.f32 %v1599_v7  ;;  %1816 = vmatprep.subr.mxu0 %v2731_v54  ;;  %2545 = vmatprep.subr.mxu1 %v4368_v62 }
 0x339   : > { %1817 = vmatpush1.msra.mxu0 %v2732_v1  ;;  %2546 = vmatpush3.msra.mxu1 %v2733_v9  ;;  %v1800_v9 = vunpack.c.h.bf16 %v1797_v34 }
 0x33a   : > { %1818 = vmatprep.subr.mxu0 %v2734_v59  ;;  %2547 = vmatprep.subr.mxu1 %v4368_v62 }
 0x33b   : > { %1819 = vmatpush1.msra.mxu0 %v2735_v57  ;;  %2548 = vmatpush3.msra.mxu1 %v2736_v55 }
 0x33c   : > { %1820 = vmatprep.subr.mxu0 %v2737_v12  ;;  %2549 = vmatprep.subr.mxu1 %v4368_v62 }
 0x33d   : > { %1821 = vmatpush1.msra.mxu0 %v2738_v13  ;;  %2550 = vmatpush3.msra.mxu1 %v2739_v14 }
 0x33e   : > { %1822 = vmatprep.subr.mxu0 %v2740_v15  ;;  %2551 = vmatprep.subr.mxu1 %v4368_v62 }
 0x33f   : > { %1823 = vmatpush1.msra.mxu0 %v2741_v16  ;;  %2552 = vmatpush3.msra.mxu1 %v2742_v17  ;;  %v1791_v17 = vpop.permute.xlu0 %1790 }
 0x340   : > { %1824 = vmatprep.subr.mxu0 %v2743_v18  ;;  %2553 = vmatprep.subr.mxu1 %v4368_v62  ;;  %vm1792_vm15 = vcmp.eq.s32.totalorder %v1791_v17, 1 }
 0x341   : > { %1825 = vmatpush1.msra.mxu0 %v2744_v20  ;;  %2554 = vmatpush3.msra.mxu1 %v2745_v21 }
 0x342   : > { %1826 = vmatprep.subr.mxu0 %v2746_v22  ;;  %2555 = vmatprep.subr.mxu1 %v4368_v62 }
 0x343   : > { %1827 = vmatpush1.msra.mxu0 %v2747_v24  ;;  %2556 = vmatpush3.msra.mxu1 %v2748_v25 }
 0x344   : > { %1828 = vmatprep.subr.mxu0 %v2749_v48  ;;  %2557 = vmatprep.subr.mxu1 %v4368_v62  ;;  %v1801_v48 = vunpack.c.l.bf16 %v4042_v30 }
 0x345   : > { %v2641_v60 = vpop.eup %2640  ;;  %1829 = vmatpush1.msra.mxu0 %v2750_v49  ;;  %2558 = vmatpush3.msra.mxu1 %v2751_v53 }
 0x346   : > { %1830 = vmatprep.subr.mxu0 %v2752_v33  ;;  %2559 = vmatprep.subr.mxu1 %v4368_v62  ;;  %v1602_v52 = vmul.f32 %v2641_v60, %v1601_v50  ;;  %v2759_v50 = vld [vmem:[%s4223_s6] ss:$0 sm:$0xff] }
 0x347   : > { %1831 = vmatpush1.msra.mxu0 %v2753_v45  ;;  %2560 = vmatpush3.msra.mxu1 %v2754_v5  ;;  %v1970_v45 = vpop.permute.xlu1 %1969 }
 0x348   : > { %1832 = vmatprep.subr.mxu0 %v2755_v37  ;;  %2561 = vmatprep.subr.mxu1 %v4368_v62  ;;  %v1604_v39 = vadd.f32 %v1603_v47, %v1602_v52 }
 0x349   : > { %1833 = vmatpush1.msra.mxu0 %v2756_v61  ;;  %1866 = vmatprep.mubr.f32.mxu0 %v4368_v62 }
 0x34a   : > { %2562 = vmatpush3.msra.mxu1 %v2757_v26  ;;  %2563 = vmatprep.mubr.msk.f32.mxu1 %vm2770_vm0, %v4368_v62  ;;  %v4187_v23 = vsel %vm1611_vm14, %v1604_v39, %v3832_v42  ;;  %v1613_v31 = vsel %vm1611_vm14, %v1604_v39, 0.0  ;;  %vm1971_vm0 = vcmp.eq.s32.totalorder %v1970_v45, 1 }
 0x34b   : > { %2140 = vst [vmem:[%s2861_s18 + $0x8] sm:$0xff] %v1613_v31  ;;  %1867 = vmatmul.mubr.f32.vlgmr.msra.gmra.mxu0 %v4187_v23  ;;  %2564 = vmatmul.mubr.f32.vlgmr.msra.gmra.mxu1 %v4187_v23 }
 0x3ea   : > { %v1689_v29 = vpop.f32.mrf.mxu0  ;;  %v1760_v32 = vpop.f32.mrf.mxu1 }
 0x3eb   : > { %v1764_v35 = vadd.f32 %v1689_v29, %v1619_v28  ;;  %v1778_v4 = vadd.f32 %v2758_v36, %v1760_v32 }
 0x3ec   : > { %v2530_v38 = vpop.f32.mrf.mxu1  ;;  %v1691_v51 = vpop.f32.mrf.mxu0 }
 0x3ed   : > { %v2143_v41 = vmul.f32 -1.442695, %v1764_v35  ;;  %v1771_v62 = vadd.f32 %v1691_v51, %v1620_v44 }
 0x3ef   : > { %2642 = vpow2.f32 %v2143_v41  ;;  %v2144_v42 = vmul.f32 -1.442695, %v1771_v62 }
 0x3f1   : > { %2644 = vpow2.f32 %v2144_v42 }
 0x3fc   : > { %v2643_v56 = vpop.eup %2642 }
 0x3fd   : > { %v1768_v63 = vadd.f32 1.0, %v2643_v56 }
 0x3fe   : > { %v2645_v43 = vpop.eup %2644 }
 0x3ff   : > { %2646 = vrcp.f32 %v1768_v63  ;;  %v1775_v2 = vadd.f32 1.0, %v2645_v43 }
 0x401   : > { %2648 = vrcp.f32 %v1775_v2 }
 0x40b   : > { %v1868_v6 = vpop.f32.mrf.mxu0  ;;  %v1939_v7 = vpop.f32.mrf.mxu1 }
 0x40c   : > { %v2647_v8 = vpop.eup %2646  ;;  %v1943_v10 = vadd.f32 %v1868_v6, %v1799_v46  ;;  %v1957_v60 = vadd.f32 %v2759_v50, %v1939_v7 }
 0x40d   : > { %v1779_v11 = vmul.f32 %v2647_v8, %v1778_v4  ;;  %v2565_v54 = vpop.f32.mrf.mxu1  ;;  %v1870_v57 = vpop.f32.mrf.mxu0 }
 0x40e   : > { %v2146_v1 = vmul.f32 -1.442695, %v1943_v10  ;;  %v1950_v55 = vadd.f32 %v1870_v57, %v1800_v9  ;;  %v2649_v12 = vpop.eup %2648 }
 0x40f   : > { %v1780_v59 = vadd.f32 %v1779_v11, %v1621_v3  ;;  %v1782_v14 = vsub.f32 1.0, %v2649_v12  ;;  %v1784_v19 = vmul.f32 %v2649_v12, %v4016_v0 }
 0x410   : > { %2650 = vpow2.f32 %v2146_v1  ;;  %v2147_v40 = vmul.f32 -1.442695, %v1950_v55 }
 0x411   : > { %2652 = vtanh.f32 %v1780_v59 }
 0x412   : > { %2654 = vpow2.f32 %v2147_v40 }
 0x41d   : > { %v2651_v13 = vpop.eup %2650 }
 0x41e   : > { %v2653_v15 = vpop.eup %2652  ;;  %v1947_v16 = vadd.f32 1.0, %v2651_v13 }
 0x41f   : > { %v1783_v18 = vmul.f32 %v2653_v15, %v1782_v14  ;;  %v2655_v24 = vpop.eup %2654 }
 0x420   : > { %2656 = vrcp.f32 %v1947_v16  ;;  %v1954_v25 = vadd.f32 1.0, %v2655_v24 }
 0x421   : > { %v1785_v20 = vadd.f32 %v1784_v19, %v1783_v18 }
 0x422   : > { %2658 = vrcp.f32 %v1954_v25 }
 0x423   : > { %v1793_v21 = vsel %vm1792_vm15, %v1785_v20, %v4016_v0  ;;  %v1794_v22 = vsel %vm1792_vm15, %v1785_v20, 0.0 }
 0x424   : > { %2145 = vst [vmem:[%s2846_s25 + $0x18] sm:$0xff] %v1794_v22  ;;  %1975 = vst [vmem:[#allocation2] sm:$0xff] %v1793_v21 }
 0x425   : > { %1977 = vst [vmem:[%s4226_s9] sm:$0xff] %v1793_v21 }
 0x42d   : > { %v2657_v49 = vpop.eup %2656 }
 0x42e   : > { %v1958_v53 = vmul.f32 %v2657_v49, %v1957_v60 }
 0x42f   : > { %v2659_v33 = vpop.eup %2658 }
 0x430   : > { %v1959_v0 = vadd.f32 %v1958_v53, %v1801_v48  ;;  %v1961_v52 = vsub.f32 1.0, %v2659_v33  ;;  %v1963_v58 = vmul.f32 %v2659_v33, %v4187_v23 }
 0x432   : > { %2660 = vtanh.f32 %v1959_v0 }
 0x43f   : > { %v2661_v47 = vpop.eup %2660 }
 0x440   : > { %v1962_v5 = vmul.f32 %v2661_v47, %v1961_v52 }
 0x442   : > { %v1964_v37 = vadd.f32 %v1963_v58, %v1962_v5 }
 0x444   : > { %v1972_v30 = vsel %vm1971_vm0, %v1964_v37, %v4187_v23  ;;  %v1973_v39 = vsel %vm1971_vm0, %v1964_v37, 0.0 }
 0x445   : > { %1974 = vst [vmem:[%s2861_s18] sm:$0xff] %v1973_v39  ;;  %1976 = vst [vmem:[#allocation3] sm:$0xff] %v1972_v30 }
 0x446   : > { %1978 = vst [vmem:[%s4227_s10] sm:$0xff] %v1972_v30 }
 0x447 PF: > { %s4488_s30 = sld [smem:[#allocation4_spill]] }
 0x44d   : > { %s21_s13 = sadd.s32 1, %s4488_s30  }
 0x44e   : > { %p18_p6 = scmp.ge.s32.totalorder %s21_s13, 4  }
 0x450   :  { %20 = sbr.rel (!%p18_p6) target bundleno = 1 (0x1), region = 125 }

</bundles_post_ra>
